<compile_context>
chip_gen: v6e
topology: v6e:2x2x1
jax: 0.10.0
libtpu: 0.0.40
codegen_flags: <defaults>
</compile_context>

<pallas_src>
import functools

import jax
import jax.numpy as jnp
from jax.experimental import pallas as pl
from jax.experimental.pallas import tpu as pltpu


# ---------------------------------------------------------------------------
# helpers
# ---------------------------------------------------------------------------

def _pick_tile(dim, cap, mult):
    """Largest tile <= cap that divides `dim` AND is a multiple of `mult`.

    Falls back to the full dimension (a block equal to the array extent is
    always legal w.r.t. the (8, 128) BlockSpec divisibility rule); never
    returns an arbitrary divisor that could fail to lower.
    """
    cap = min(cap, dim)
    t = (cap // mult) * mult
    while t >= mult:
        if dim % t == 0:
            return t
        t -= mult
    return dim


@functools.lru_cache(maxsize=1)
def _vmem_limit_bytes():
    """Generation-gated scoped-VMEM limit.

    v5e/v6e have 128 MiB physical VMEM, v7x only 64 MiB; use ~3/4 of whatever
    the chip reports (capped at 100 MiB) so larger tiles fit without risking a
    VMEM OOM when porting between generations.
    """
    cap = 128 * 1024 * 1024
    try:
        info = pltpu.get_tpu_info()
        cap = int(getattr(info, "vmem_capacity_bytes", cap) or cap)
    except Exception:
        pass
    return min((cap * 3) // 4, 100 * 1024 * 1024)


# ---------------------------------------------------------------------------
# tiled matmul (+bias) kernel:  o = x @ w + b
# ---------------------------------------------------------------------------

def _matmul_bias_kernel(x_ref, w_ref, b_ref, o_ref, acc_ref, *, compute_dtype):
    k = pl.program_id(2)

    @pl.when(k == 0)
    def _():
        acc_ref[...] = jnp.zeros_like(acc_ref)

    acc_ref[...] += jnp.dot(
        x_ref[...].astype(compute_dtype),
        w_ref[...].astype(compute_dtype),
        preferred_element_type=jnp.float32,
    )

    @pl.when(k == pl.num_programs(2) - 1)
    def _():
        o_ref[...] = (acc_ref[...] + b_ref[...].astype(jnp.float32)).astype(o_ref.dtype)


def pallas_matmul_bias(x2d, w, b, *, tm_cap=512, tn_cap=512, tk_cap=512,
                       compute_dtype=None):
    M, K = x2d.shape
    _, Nout = w.shape
    tm = _pick_tile(M, tm_cap, 8)
    tn = _pick_tile(Nout, tn_cap, 128)
    tk = _pick_tile(K, tk_cap, 128)
    grid = (M // tm, Nout // tn, K // tk)

    kernel = functools.partial(
        _matmul_bias_kernel, compute_dtype=compute_dtype or x2d.dtype)

    return pl.pallas_call(
        kernel,
        out_shape=jax.ShapeDtypeStruct((M, Nout), x2d.dtype),
        grid_spec=pltpu.PrefetchScalarGridSpec(
            num_scalar_prefetch=0,
            grid=grid,
            in_specs=[
                pl.BlockSpec((tm, tk), lambda i, j, k: (i, k)),
                pl.BlockSpec((tk, tn), lambda i, j, k: (k, j)),
                pl.BlockSpec((1, tn), lambda i, j, k: (0, j)),
            ],
            out_specs=pl.BlockSpec((tm, tn), lambda i, j, k: (i, j)),
            scratch_shapes=[pltpu.VMEM((tm, tn), jnp.float32)],
        ),
        compiler_params=pltpu.CompilerParams(
            dimension_semantics=("parallel", "parallel", "arbitrary"),
            vmem_limit_bytes=_vmem_limit_bytes(),
        ),
    )(x2d, w, b.reshape(1, Nout))


# ---------------------------------------------------------------------------
# flash attention kernel: reads q/k/v slices straight from the (B, N, 3C) QKV
# tensor (softmax scale already folded into q), writes (B, N, C) lane-dense.
# ---------------------------------------------------------------------------

def _flash_attn_kernel(q_ref, k_ref, v_ref, o_ref, q_scr, m_ref, l_ref, acc_ref,
                       *, heads_per_block, head_dim, compute_dtype):
    G, D = heads_per_block, head_dim
    ki = pl.program_id(3)
    tq = q_ref.shape[1]
    tk = k_ref.shape[1]

    @pl.when(ki == 0)
    def _():
        # Init stats/accumulator and stage q once per (b, h, qi): the
        # (tq, G*D) -> (G, tq, D) reshape/transpose and the dtype cast are
        # invariant across the KV loop, so they are hoisted out of it.
        m_ref[...] = jnp.full_like(m_ref, -jnp.inf)
        l_ref[...] = jnp.zeros_like(l_ref)
        acc_ref[...] = jnp.zeros_like(acc_ref)
        q = q_ref[0].reshape(tq, G, D)
        q_scr[...] = jnp.transpose(q, (1, 0, 2)).astype(compute_dtype)

    k = jnp.transpose(k_ref[0].reshape(tk, G, D), (1, 0, 2)).astype(compute_dtype)
    v = jnp.transpose(v_ref[0].reshape(tk, G, D), (1, 0, 2)).astype(compute_dtype)

    # s[g, q, k] = sum_d q[g,q,d] * k[g,k,d]
    # TODO(synk): verify via bundle dump whether Mosaic inserts an implicit
    # per-step vxpose of k here; if XLU is the binding slot, pre-transpose k.
    s = jax.lax.dot_general(
        q_scr[...], k,
        dimension_numbers=(((2,), (2,)), ((0,), (0,))),
        preferred_element_type=jnp.float32,
    )                                                              # (G, tq, tk)

    # keepdims stats: broadcasts below are pure lane-broadcasts (no relayout).
    m_prev = m_ref[...]                                            # (G, tq, 1)
    m_new = jnp.maximum(m_prev, jnp.max(s, axis=-1, keepdims=True))
    alpha = jnp.exp(m_prev - m_new)                                # (G, tq, 1)
    p = jnp.exp(s - m_new)                                         # (G, tq, tk)
    l_ref[...] = alpha * l_ref[...] + jnp.sum(p, axis=-1, keepdims=True)

    # pv[g, q, d] = sum_k p[g,q,k] * v[g,k,d]
    pv = jax.lax.dot_general(
        p.astype(compute_dtype), v,
        dimension_numbers=(((2,), (1,)), ((0,), (0,))),
        preferred_element_type=jnp.float32,
    )                                                              # (G, tq, D)
    # TODO(synk): acc is (G, tq, D) with D=32 in the lane dim (4x lane-padded);
    # switch to a lane-dense (tq, G*D) accumulator if bundles show this hot.
    acc_ref[...] = alpha * acc_ref[...] + pv
    m_ref[...] = m_new

    @pl.when(ki == pl.num_programs(3) - 1)
    def _():
        # normalize once, O(tq*D); denominator via EUP approximate reciprocal
        inv_l = pl.reciprocal(l_ref[...], approx=True)             # (G, tq, 1)
        out = acc_ref[...] * inv_l                                  # (G, tq, D)
        out = jnp.transpose(out, (1, 0, 2)).reshape(tq, G * D)      # lane-dense
        o_ref[0] = out.astype(o_ref.dtype)


def pallas_flash_mha(qkv, num_heads, *, tq_cap=512, tk_cap=512,
                     compute_dtype=None):
    """qkv: (B, N, 3C) laid out as [q(H*D) | k(H*D) | v(H*D)] -> (B, N, C).

    The softmax scale must already be folded into the Q columns of the QKV
    projection (see attention_forward).
    """
    B, N, threeC = qkv.shape
    C = threeC // 3
    H = num_heads
    D = C // H
    # Full head group (G = H): fewer grid steps, contiguous per-row K/V DMAs
    # out of the strided (B, N, 3C) tensor, 256-lane-wide unmasked out stores.
    G = H
    HG = 1
    gd = G * D                                                     # == C
    assert gd % 128 == 0 or gd == threeC, \
        "head-group lane width must be a multiple of 128"
    tq = _pick_tile(N, tq_cap, 8)
    tk = _pick_tile(N, tk_cap, 8)
    grid = (B, HG, N // tq, N // tk)
    cdt = compute_dtype or qkv.dtype

    kernel = functools.partial(
        _flash_attn_kernel, heads_per_block=G, head_dim=D, compute_dtype=cdt)

    q_spec = pl.BlockSpec((1, tq, gd), lambda b, h, qi, ki: (b, qi, h))
    # TODO(synk): add pipeline_mode=pl.Buffered(3) on k/v specs if profiles
    # show exposed DMA at large tk.
    k_spec = pl.BlockSpec((1, tk, gd), lambda b, h, qi, ki: (b, ki, HG + h))
    v_spec = pl.BlockSpec((1, tk, gd), lambda b, h, qi, ki: (b, ki, 2 * HG + h))
    o_spec = pl.BlockSpec((1, tq, gd), lambda b, h, qi, ki: (b, qi, h))

    return pl.pallas_call(
        kernel,
        out_shape=jax.ShapeDtypeStruct((B, N, C), qkv.dtype),
        grid_spec=pltpu.PrefetchScalarGridSpec(
            num_scalar_prefetch=0,
            grid=grid,
            in_specs=[q_spec, k_spec, v_spec],
            out_specs=o_spec,
            scratch_shapes=[
                pltpu.VMEM((G, tq, D), cdt),            # staged (hoisted) q
                pltpu.VMEM((G, tq, 1), jnp.float32),    # running max m
                pltpu.VMEM((G, tq, 1), jnp.float32),    # running sum l
                pltpu.VMEM((G, tq, D), jnp.float32),    # output accumulator
            ],
        ),
        compiler_params=pltpu.CompilerParams(
            dimension_semantics=("parallel", "parallel", "parallel", "arbitrary"),
            vmem_limit_bytes=_vmem_limit_bytes(),
        ),
    )(qkv, qkv, qkv)


# ---------------------------------------------------------------------------
# Attention module (parameters + forward glue)
# ---------------------------------------------------------------------------

def init_attention_params(key, dim, qkv_bias=False):
    k1, k2, k3 = jax.random.split(key, 3)
    std = dim ** -0.5
    params = {
        # PyTorch nn.Linear weight is (out, in); we store the transposed (in, out)
        "qkv_w": jax.random.normal(k1, (dim, 3 * dim), jnp.float32) * std,
        "proj_w": jax.random.normal(k2, (dim, dim), jnp.float32) * std,
        "proj_b": jax.random.normal(k3, (dim,), jnp.float32) * 0.02,
    }
    if qkv_bias:
        params["qkv_b"] = jnp.zeros((3 * dim,), jnp.float32)
    return params


def attention_forward(params, x, num_heads, compute_dtype=None):
    """Equivalent to Attention.forward(x) with past_kv=None, use_cache=False.

    attn_drop / proj_drop are p=0.0 no-ops in the reference config.
    On v6e/v7x pass compute_dtype=jnp.bfloat16 to feed the MXU bf16 operands
    (f32 accumulation / f32 softmax statistics are kept either way).
    """
    # TODO(synk): past_kv / use_cache (KV-cache concat) path not implemented.
    B, N, C = x.shape
    H = num_heads
    D = C // H
    scale = D ** -0.5

    # Fold the softmax scale into the Q slice of the QKV projection so the
    # flash kernel never multiplies q by scale.  (In production pre-fold once
    # at init; done per-call here so params stay shared with the reference.)
    qkv_w = params["qkv_w"]
    qkv_w = jnp.concatenate([qkv_w[:, :C] * scale, qkv_w[:, C:]], axis=1)
    qkv_b = params.get("qkv_b")
    if qkv_b is None:
        qkv_b = jnp.zeros((3 * C,), x.dtype)
    else:
        qkv_b = jnp.concatenate([qkv_b[:C] * scale, qkv_b[C:]])

    x2d = x.reshape(B * N, C)

    # QKV projection (tiled, pipelined)
    qkv = pallas_matmul_bias(x2d, qkv_w, qkv_b,
                             compute_dtype=compute_dtype)          # (B*N, 3C)
    qkv = qkv.reshape(B, N, 3 * C)                                 # free reshape

    # flash attention; q/k/v sliced via index_map, output already (B, N, C)
    o = pallas_flash_mha(qkv, H, compute_dtype=compute_dtype)

    # output projection (tiled, pipelined)
    out = pallas_matmul_bias(o.reshape(B * N, C), params["proj_w"],
                             params["proj_b"], compute_dtype=compute_dtype)
    return out.reshape(B, N, C), None                              # present_kv = None


# pure-JAX reference (the 'math' path) for sanity checking
def attention_reference(params, x, num_heads):
    B, N, C = x.shape
    H = num_heads
    D = C // H
    scale = D ** -0.5
    qkv = x @ params["qkv_w"]
    if "qkv_b" in params:
        qkv = qkv + params["qkv_b"]
    qkv = qkv.reshape(B, N, 3, H, D).transpose(2, 0, 3, 1, 4)
    q, k, v = qkv[0], qkv[1], qkv[2]
    attn = jnp.einsum("bhqd,bhkd->bhqk", q, k) * scale
    attn = jax.nn.softmax(attn, axis=-1)
    o = jnp.einsum("bhqk,bhkd->bhqd", attn, v)
    o = o.transpose(0, 2, 1, 3).reshape(B, N, C)
    return o @ params["proj_w"] + params["proj_b"]


if __name__ == "__main__":
    B, N, C = 2, 512, 256
    num_heads = 8

    key = jax.random.PRNGKey(0)
    kx, kp = jax.random.split(key)
    x = jax.random.normal(kx, (B, N, C), jnp.float32)
    params = init_attention_params(kp, C, qkv_bias=False)

    out, present_kv = attention_forward(params, x, num_heads)
    out = jax.block_until_ready(out)

    ref = attention_reference(params, x, num_heads)
    assert out.shape == (B, N, C)
    assert present_kv is None
    assert jnp.allclose(out, ref, atol=2e-2, rtol=2e-2), "mismatch vs reference"

    print("KERNEL_OK")
</pallas_src>

<mosaic_0001>
module attributes {stable_mosaic.version = 11 : i64} {
  func.func @_matmul_bias_kernel(%arg0: i32, %arg1: i32, %arg2: i32, %arg3: memref<512x256xf32, #tpu.memory_space<vmem>>, %arg4: memref<256x384xf32, #tpu.memory_space<vmem>>, %arg5: memref<1x384xf32, #tpu.memory_space<vmem>>, %arg6: memref<512x384xf32, #tpu.memory_space<vmem>>, %arg7: memref<512x384xf32, #tpu.memory_space<vmem>>) attributes {dimension_semantics = [#tpu.dimension_semantics<parallel>, #tpu.dimension_semantics<parallel>, #tpu.dimension_semantics<arbitrary>], iteration_bounds = array<i64: 2, 2, 1>, scalar_prefetch = 0 : i64, scratch_operands = 1 : i64, tpu.core_type = #tpu.core_type<tc>, window_params = [{transform_indices = @transform_0, window_bounds = array<i64: 512, 256>}, {transform_indices = @transform_1, window_bounds = array<i64: 256, 384>}, {transform_indices = @transform_2, window_bounds = array<i64: 1, 384>}, {transform_indices = @transform_3, window_bounds = array<i64: 512, 384>}]} {
    %c0_i32 = arith.constant 0 : i32
    %0 = arith.cmpi eq, %arg2, %c0_i32 : i32
    %1 = arith.extui %0 : i1 to i32
    %c0_i32_0 = arith.constant 0 : i32
    %2 = arith.cmpi ne, %1, %c0_i32_0 : i32
    scf.if %2 {
      %cst_10 = arith.constant 0.000000e+00 : f32
      %12 = vector.broadcast %cst_10 : f32 to vector<512x384xf32>
      %c0_11 = arith.constant 0 : index
      %c0_12 = arith.constant 0 : index
      %13 = vector.load %arg7[%c0_11, %c0_12] : memref<512x384xf32, #tpu.memory_space<vmem>>, vector<512x384xf32>
      tpu.vector_store %arg7[%c0_11, %c0_12], %12 {strides = array<i32>} : memref<512x384xf32, #tpu.memory_space<vmem>>, vector<512x384xf32>,
    } else {
    }
    %c0 = arith.constant 0 : index
    %c0_1 = arith.constant 0 : index
    %3 = vector.load %arg7[%c0, %c0_1] : memref<512x384xf32, #tpu.memory_space<vmem>>, vector<512x384xf32>
    %c0_2 = arith.constant 0 : index
    %c0_3 = arith.constant 0 : index
    %4 = vector.load %arg3[%c0_2, %c0_3] : memref<512x256xf32, #tpu.memory_space<vmem>>, vector<512x256xf32>
    %c0_4 = arith.constant 0 : index
    %c0_5 = arith.constant 0 : index
    %5 = vector.load %arg4[%c0_4, %c0_5] : memref<256x384xf32, #tpu.memory_space<vmem>>, vector<256x384xf32>
    %cst = arith.constant dense<0.000000e+00> : vector<512x384xf32>
    %6 = tpu.matmul %4, %5, %cst {dimension_numbers = #tpu.dot_dimension_numbers<[1], [0], [0], [1], [0, 0, 1, 1], [], []>} : vector<512x256xf32>, vector<256x384xf32>, vector<512x384xf32> -> vector<512x384xf32>
    %7 = arith.addf %3, %6 : vector<512x384xf32>
    %c0_6 = arith.constant 0 : index
    %c0_7 = arith.constant 0 : index
    %8 = vector.load %arg7[%c0_6, %c0_7] : memref<512x384xf32, #tpu.memory_space<vmem>>, vector<512x384xf32>
    tpu.vector_store %arg7[%c0_6, %c0_7], %7 {strides = array<i32>} : memref<512x384xf32, #tpu.memory_space<vmem>>, vector<512x384xf32>,
    %c0_i32_8 = arith.constant 0 : i32
    %9 = arith.cmpi eq, %arg2, %c0_i32_8 : i32
    %10 = arith.extui %9 : i1 to i32
    %c0_i32_9 = arith.constant 0 : i32
    %11 = arith.cmpi ne, %10, %c0_i32_9 : i32
    scf.if %11 {
      %c0_10 = arith.constant 0 : index
      %c0_11 = arith.constant 0 : index
      %12 = vector.load %arg7[%c0_10, %c0_11] : memref<512x384xf32, #tpu.memory_space<vmem>>, vector<512x384xf32>
      %c0_12 = arith.constant 0 : index
      %c0_13 = arith.constant 0 : index
      %13 = vector.load %arg5[%c0_12, %c0_13] : memref<1x384xf32, #tpu.memory_space<vmem>>, vector<1x384xf32>
      %14 = vector.broadcast %13 : vector<1x384xf32> to vector<512x384xf32>
      %15 = arith.addf %12, %14 : vector<512x384xf32>
      %c0_14 = arith.constant 0 : index
      %c0_15 = arith.constant 0 : index
      %16 = vector.load %arg6[%c0_14, %c0_15] : memref<512x384xf32, #tpu.memory_space<vmem>>, vector<512x384xf32>
      tpu.vector_store %arg6[%c0_14, %c0_15], %15 {strides = array<i32>} : memref<512x384xf32, #tpu.memory_space<vmem>>, vector<512x384xf32>,
    } else {
    }
    return
  }
  func.func @transform_0(%arg0: i32, %arg1: i32, %arg2: i32) -> (i32, i32) {
    %c0_i32 = arith.constant 0 : i32
    return %arg0, %arg2 : i32, i32
  }
  func.func @transform_1(%arg0: i32, %arg1: i32, %arg2: i32) -> (i32, i32) {
    %c0_i32 = arith.constant 0 : i32
    return %arg2, %arg1 : i32, i32
  }
  func.func @transform_2(%arg0: i32, %arg1: i32, %arg2: i32) -> (i32, i32) {
    %c0_i32 = arith.constant 0 : i32
    %c0_i32_0 = arith.constant 0 : i32
    return %c0_i32, %arg1 : i32, i32
  }
  func.func @transform_3(%arg0: i32, %arg1: i32, %arg2: i32) -> (i32, i32) {
    %c0_i32 = arith.constant 0 : i32
    return %arg0, %arg1 : i32, i32
  }
}

</mosaic_0001>

<bundles_post_ra>
// kernel: tpu_custom_call.1
= control target key start
LH: loop header
LB: loop body
LE: loop exit
PB: predicated region body
PF: predicated region fallthrough
CT: control target
= control target key end

     0   :  { %s4287_s0 = inlined_call_operand.hbm [shape: f32[1024,256], index: 0, kind: input, shape index: {}]   ;;  %s4288_s1 = inlined_call_operand.hbm [shape: f32[256,768], index: 1, kind: input, shape index: {}]   ;;  %s4289_s2 = inlined_call_operand.hbm [shape: f32[1,768], index: 2, kind: input, shape index: {}]   ;;  %s4290_s3 = inlined_call_operand.hbm [shape: f32[1024,768], index: 3, kind: output, shape index: {}]  }
   0x1   :  { %4301 = sst [smem:[#allocation25_spill]] %s4287_s0 }
   0x2   :  { %4302 = sst [smem:[#allocation26_spill]] %s4288_s1 }
   0x3   :  { %4303 = sst [smem:[#allocation27_spill]] %s4290_s3 }
   0x4   :  { %8 = vsyncpa [#allocation4], 0 }
   0x5   :  { %10 = vsyncpa [#allocation4 + $0x1], 0 }
   0x6   :  { %11 = vsyncpa [#allocation7], 0 }
   0x7   :  { %13 = vsyncpa [#allocation7 + $0x1], 0 }
   0x8   :  { %14 = vsyncpa [#allocation5], 0 }
   0x9   :  { %16 = vsyncpa [#allocation5 + $0x1], 0  ;;  %s3323_s12 = smov 0   ;;  %s3325_s13 = smov 0  }
   0xa   :  { %s3327_s14 = smov 0   ;;  %s3329_s15 = smov 0  }
   0xb   :  { %s3331_s16 = smov 0   ;;  %s3333_s17 = smov 0  }
   0xc   :  { %s3335_s18 = smov 0   ;;  %s3337_s19 = smov 0  }
   0xd   :  { %s3339_s20 = smov 0   ;;  %s3341_s21 = smov 0  }
   0xe   :  { %s3343_s22 = smov 0   ;;  %s3345_s23 = smov 0  }
   0xf   :  { %s3347_s24 = smov 0   ;;  %s3349_s25 = smov 0  }
  0x10 LB: > { %4304 = sst [smem:[#allocation13_spill]] %s3236_s12  ;;  %p58_p0 = scmp.eq.s32.totalorder %s3288_s25, 0  ;;  %s3288_s25 = sphi %s3349_s25, %s22_s25   ;;  %s3284_s24 = sphi %s3347_s24, %s4345_s24   ;;  %s3280_s23 = sphi %s3345_s23, %s4344_s23   ;;  %s3276_s22 = sphi %s3343_s22, %s4343_s22   ;;  %s3272_s21 = sphi %s3341_s21, %s4353_s21   ;;  %s3268_s20 = sphi %s3339_s20, %s4341_s20   ;;  %s3264_s19 = sphi %s3337_s19, %s4352_s19   ;;  %s3260_s18 = sphi %s3335_s18, %s4351_s18   ;;  %s3256_s17 = sphi %s3333_s17, %s4350_s17   ;;  %s3252_s16 = sphi %s3331_s16, %s4349_s16   ;;  %s3248_s15 = sphi %s3329_s15, %s4348_s15   ;;  %s3244_s14 = sphi %s3327_s14, %s4338_s14   ;;  %s3240_s13 = sphi %s3325_s13, %s4347_s13   ;;  %s3236_s12 = sphi %s3323_s12, %s4346_s12  }
  0x11   : > { %4305 = sst [smem:[#allocation14_spill]] %s3244_s14  ;;  %p85_p1 = scmp.ne.s32.totalorder %s3256_s17, %s3252_s16 }
  0x12   : > { %4306 = sst [smem:[#allocation15_spill]] %s3268_s20  ;;  %p91_p2 = scmp.ne.s32.totalorder %s3252_s16, %s3248_s15 }
  0x13   : > { %4307 = sst [smem:[#allocation16_spill]] %s3272_s21  ;;  %p87_p3 = por %p85_p1, %p58_p0 }
  0x14   : > { %4308 = sst [smem:[#allocation17_spill]] %s3276_s22  ;;  %p2933_p4 = scmp.lt.s32.totalorder %s3288_s25, 4 }
  0x15   : > { %4309 = sst [smem:[#allocation18_spill]] %s3280_s23  ;;  %s193_s28 = sand.u32 1, %s3288_s25  }
  0x16   : > { %4310 = sst [smem:[#allocation19_spill]] %s3284_s24  ;;  %s4291_s29 = sand.u32 1, %s3256_s17  }
  0x17   : > { %s2905_s30 = smul.u32 768, %s4291_s29  ;;  %p3410_p5 = pnand %p2933_p4, %p87_p3 }
  0x18   : > { %s2903_s4 = smul.u32 384, %s3280_s23  ;;  %s4312_s1 = sld [smem:[#allocation26_spill]] }
  0x19   : > { %s197_s9 = scalar_lea.vmem [#allocation6], %s2905_s30  ;;  %s3417_s11 = scalar_lea.sflag [#allocation7], %s193_s28 }
  0x1a   : > { %s207_s10 = sshll.u32 %s197_s9, 4  ;;  %p4295_p6 = pneg %p3410_p5  ;;  %s208_s10 = int_to_ptr.vmem [resolvable:$true] %s207_s10 }
  0x1b   : > { %s3069_s29 = scalar_lea.vmem %s208_s10, 12288  ;;  %s3290_s27 = smov [#allocation6]  }
  0x1c   : > { %p3070_p7 = scmp.ne.s32.totalorder %s208_s10, %s3069_s29  ;;  %s3074_s26 = sshll.u32 %s3290_s27, 4  ;;  %s3075_s26 = int_to_ptr.vmem [resolvable:$false] %s3074_s26 }
  0x1d   : > { %s3076_s6 = scalar_lea.vmem %s3075_s26, 24576  ;;  %p3077_p10 = scmp.lt.s32.totalorder %s208_s10, %s3075_s26 }
  0x1e   : > { %s206_s8 = scalar_lea.hbm %s4312_s1, %s2903_s4  ;;  %p3072_p8 = pnand %p3070_p7, %p4295_p6 }
  0x1f   : > { %p3078_p11 = scmp.lt.s32.totalorder %s3076_s6, %s3069_s29 }
  0x20   : > { %p3073_p9 = pneg %p3072_p8 }
  0x21   : > { %p3079_p12 = por %p3078_p11, %p3077_p10 }
  0x23   : > { %p3080_p13 = pnand %p3079_p12, %p3073_p9 }
  0x25   : > { %3083 = shalt.err (!%p3080_p13)
}
  0x26   : > { %s3291_s30 = smov 768   ;;  %s3292_s26 = smov 384  }
  0x27   : > { %s3293_s27 = smov 24   ;;  %p2894_p1 = scmp.ge.s32.totalorder %s3288_s25, 1 }
  0x28   : > { %2925 = dma.hbm_to_vmem [thread:$0]  (!%p3410_p5), %s206_s8, 12288, %s208_s10, %s3417_s11, %s3291_s30, %s3292_s26, %s3293_s27  }
  0x29   : > { %p234_p3 = scmp.lt.s32.totalorder %s3288_s25, 5  ;;  %s3434_s29 = sadd.s32 4294967295, %s3288_s25  }
  0x2a   : > { %s2885_s4 = sadd.s32 4294967294, %s3288_s25   ;;  %s4314_s7 = sadd.s32 1, %s3280_s23 }
  0x2b   : > { %p3429_p7 = pnand %p2894_p1, %p234_p3  ;;  %p39_p8 = scmp.ge.s32.totalorder %s4314_s7, 2 }
  0x2c   : > { %s41_s9 = sadd.s32 1, %s3284_s24  ;;  %s50_s6 = sadd.s32 1, %s3268_s20 }
  0x2d   : > { %s4315_s1 = smov %s4314_s7  ;;  %s4357_s9 = smov (!%p39_p8, %s41_s9), %s3284_s24 }
  0x2e   : > { %s4355_s1 = smov (%p39_p8, %s4315_s1), 0  ;;  %p57_p9 = scmp.ne.s32.totalorder %s3268_s20, %s3264_s19 }
  0x2f   : > { %4316 = sst [smem:[#allocation20_spill]] %s4355_s1  ;;  %p63_p10 = scmp.ne.s32.totalorder %s3264_s19, %s3260_s18 }
  0x30   : > { %p43_p11 = scmp.ge.s32.totalorder %s4357_s9, 2  ;;  %p64_p12 = scmp.eq.s32.totalorder %s3434_s29, 0 }
  0x31   : > { %p3453_p13 = por %p58_p0, %p57_p9  ;;  %s74_s10 = ssub.s32 %s3280_s23, %s4355_s1 }
  0x32   : > { %s4359_s9 = smov (%p43_p11, %s4357_s9), 0  ;;  %p3461_p1 = por %p64_p12, %p63_p10 }
  0x33   : > { %4318 = sst [smem:[#allocation21_spill]] %s4359_s9  ;;  %p76_p3 = scmp.eq.s32.totalorder %s74_s10, 0 }
  0x34   : > { %s45_s18 = ssub.s32 %s3284_s24, %s4359_s9  ;;  %p3470_p8 = por %p91_p2, %p64_p12 }
  0x35   : > { %p48_p0 = scmp.eq.s32.totalorder %s45_s18, 0  ;;  %s129_s27 = sor.u32 %s74_s10, %s45_s18 }
  0x36   : > { %s4321_s7 = sadd.s32 1, %s3256_s17  ;;  %p130_p9 = scmp.eq.s32.totalorder %s129_s27, 0 }
  0x37   : > { %s3477_s1 = scalar_select %p76_p3, %s3256_s17, %s4321_s7  }
  0x38   : > { %s3480_s3 = scalar_select %p48_p0, %s3268_s20, %s50_s6  }
  0x39   : > { %4322 = sst [smem:[#allocation22_spill]] %s3477_s1  ;;  %s132_s22 = sadd.s32 1, %s3244_s14 }
  0x3a   : > { %4323 = sst [smem:[#allocation23_spill]] %s3480_s3  ;;  %p142_p10 = scmp.ne.s32.totalorder %s3244_s14, %s3240_s13 }
  0x3b   : > { %p143_p11 = scmp.eq.s32.totalorder %s3434_s29, 3  ;;  %p148_p12 = scmp.ne.s32.totalorder %s3240_s13, %s3236_s12 }
  0x3c   : > { %s3487_s15 = scalar_select %p130_p9, %s3244_s14, %s132_s22  }
  0x3d   : > { %p3489_p2 = por %p143_p11, %p142_p10  ;;  %p149_p6 = scmp.eq.s32.totalorder %s2885_s4, 3 }
  0x3e   : > { %4324 = sst [smem:[#allocation24_spill]] %s3487_s15  ;;  %s169_s10 = sand.u32 1, %s3268_s20  }
  0x3f   : > { %s2888_s18 = sshll.u32 %s169_s10, 10  ;;  %p3496_p3 = por %p149_p6, %p148_p12 }
  0x40   : > { %s2902_s27 = sshll.u32 %s3284_s24, 14  ;;  %s173_s7 = scalar_lea.vmem [#allocation3], %s2888_s18 }
  0x41   : > { %s4326_s6 = scalar_select %p3496_p3, 1, 0 }
  0x42   : > { %s183_s3 = sshll.u32 %s173_s7, 4  ;;  %s4327_s0 = sld [smem:[#allocation25_spill]]  ;;  %s184_s3 = int_to_ptr.vmem [resolvable:$true] %s183_s3 }
  0x43   : > { %p3508_p0 = pnand %p2933_p4, %p3453_p13  ;;  %s4329_s4 = sand.u32 1, %s3256_s17  }
  0x44   : > { %s2906_s20 = smul.u32 3, %s4329_s4  ;;  %s170_s12 = scalar_lea.sflag [#allocation4], %s169_s10 }
  0x45   : > { %s2904_s14 = smul.u32 48, %s3280_s23  ;;  %p3086_p6 = pneg %p3508_p0 }
  0x46   : > { %s3097_s18 = scalar_lea.vmem %s184_s3, 16384  ;;  %s3294_s1 = smov [#allocation3]  }
  0x47   : > { %p3098_p9 = scmp.ne.s32.totalorder %s184_s3, %s3097_s18  ;;  %s3102_s21 = sshll.u32 %s3294_s1, 4  ;;  %s3103_s21 = int_to_ptr.vmem [resolvable:$false] %s3102_s21 }
  0x48   : > { %s182_s22 = scalar_lea.hbm %s4327_s0, %s2902_s27  ;;  %s3104_s8 = scalar_lea.vmem %s3103_s21, 32768 }
  0x49   : > { %p3100_p10 = pnand %p3098_p9, %p3086_p6  ;;  %p3105_p12 = scmp.lt.s32.totalorder %s184_s3, %s3103_s21 }
  0x4a   : > { %p3106_p4 = scmp.lt.s32.totalorder %s3104_s8, %s3097_s18 }
  0x4b   : > { %p3101_p11 = pneg %p3100_p10 }
  0x4c   : > { %p3107_p13 = por %p3106_p4, %p3105_p12 }
  0x4e   : > { %p3108_p3 = pnand %p3107_p13, %p3101_p11 }
  0x50   : > { %3111 = shalt.err (!%p3108_p3)
}
  0x51   : > { %s3295_s27 = smov 256   ;;  %s3296_s7 = smov 16  }
  0x52   : > { %2922 = dma.hbm_to_vmem [thread:$0]  (!%p3508_p0), %s182_s22, 16384, %s184_s3, %s170_s12, %s3295_s27, %s3295_s27, %s3296_s7  }
  0x53   : > { %s227_s0 = scalar_lea.hbm %s4289_s2, %s2904_s14  ;;  %s221_s24 = scalar_lea.vmem [#allocation8], %s2906_s20 }
  0x54   : > { %s229_s23 = sshll.u32 %s221_s24, 4  ;;  %p4330_p9 = pneg %p3410_p5  ;;  %s230_s23 = int_to_ptr.vmem [resolvable:$true] %s229_s23 }
  0x55   : > { %s3125_s1 = scalar_lea.vmem %s230_s23, 48  ;;  %s3297_s18 = smov [#allocation8]  }
  0x56   : > { %p3126_p6 = scmp.ne.s32.totalorder %s230_s23, %s3125_s1  ;;  %s3130_s21 = sshll.u32 %s3297_s18, 4  ;;  %s3131_s21 = int_to_ptr.vmem [resolvable:$false] %s3130_s21 }
  0x57   : > { %s3132_s8 = scalar_lea.vmem %s3131_s21, 96  ;;  %p3133_p3 = scmp.lt.s32.totalorder %s230_s23, %s3131_s21 }
  0x58   : > { %p3128_p10 = pnand %p3126_p6, %p4330_p9  ;;  %p3134_p12 = scmp.lt.s32.totalorder %s3132_s8, %s3125_s1 }
  0x5a   : > { %p3129_p11 = pneg %p3128_p10  ;;  %p3135_p0 = por %p3134_p12, %p3133_p3 }
  0x5c   : > { %p3136_p4 = pnand %p3135_p0, %p3129_p11 }
  0x5e   : > { %3139 = shalt.err (!%p3136_p4)
}
  0x5f   : > { %2928 = dma.hbm_to_vmem [thread:$0]  (!%p3410_p5), %s227_s0, 48, %s230_s23, %s3417_s11  }
  0x60   : > { %238 = sbr.rel (%p3429_p7) target bundleno = 637 (0x27d), region = 32  ;;  %s240_s3 = sand.u32 (!%p3429_p7), 1, %s3264_s19  }
  0x61   : > { %s2895_s12 = sshll.u32 (!%p3429_p7), %s240_s3, 10  ;;  %s241_s14 = scalar_lea.sflag (!%p3429_p7), [#allocation4], %s240_s3 }
  0x62   : > { %s3531_s20 = scalar_lea.vmem (!%p3429_p7), [#allocation3], %s2895_s12 }
  0x65   : > { %3223 = dma.done.wait (%p3461_p1), %s241_s14, 16384  }
  0x66   : > { %3225 = vsyncadd (%p3461_p1), %s241_s14, 4294950912  ;;  %s249_s0 = sand.u32 1, %s3434_s29   ;;  %s251_s23 = sand.u32 1, %s3252_s16  }
  0x67   : > { %s2907_s24 = smul.u32 768, %s251_s23  ;;  %s250_s5 = scalar_lea.sflag [#allocation7], %s249_s0 }
  0x69   : > { %s3541_s11 = scalar_lea.vmem [#allocation6], %s2907_s24 }
  0x6a   : > { %3227 = dma.done.wait (%p3470_p8), %s250_s5, 12336  }
  0x6b   : > { %3229 = vsyncadd (%p3470_p8), %s250_s5, 4294954960  ;;  %v3298_v0 = vmov 0.0   ;;  %v864_v1 = vld [vmem:[%s3541_s11 + $0x170] sm:$0xff]  ;;  %v863_v2 = vld [vmem:[%s3541_s11 + $0x168] sm:$0xff]  ;;  %s2908_s28 = smul.u32 3, %s251_s23  ;;  %s292_s29 = sand.u32 1, %s3240_s13  }
  0x6c   : > { %1363 = vmatprep.subr.mxu1 %v3298_v0  ;;  %v865_v3 = vld [vmem:[%s3541_s11 + $0x178] sm:$0xff]  ;;  %914 = vmatprep.subr.mxu0 %v864_v1  ;;  %v860_v5 = vld [vmem:[%s3541_s11 + $0x150] sm:$0xff]  ;;  %v862_v6 = vld [vmem:[%s3541_s11 + $0x160] sm:$0xff]  ;;  %s2909_s26 = smul.u32 1536, %s292_s29  ;;  %s4331_s22 = sld [smem:[#allocation16_spill]] }
  0x6d   : > { %1364 = vmatpush1.msra.mxu1 %v865_v3  ;;  %v861_v4 = vld [vmem:[%s3541_s11 + $0x158] sm:$0xff]  ;;  %915 = vmatpush1.msra.mxu0 %v863_v2  ;;  %v858_v7 = vld [vmem:[%s3541_s11 + $0x140] sm:$0xff]  ;;  %v859_v8 = vld [vmem:[%s3541_s11 + $0x148] sm:$0xff]  ;;  %s262_s30 = scalar_lea.vmem [#allocation8], %s2908_s28  ;;  %s4332_s27 = sld [smem:[#allocation17_spill]] }
  0x6e   : > { %1365 = vmatprep.subr.mxu1 %v3298_v0  ;;  %916 = vmatprep.subr.mxu0 %v861_v4  ;;  %v857_v9 = vld [vmem:[%s3541_s11 + $0x138] sm:$0xff]  ;;  %v855_v10 = vld [vmem:[%s3541_s11 + $0x128] sm:$0xff]  ;;  %v856_v11 = vld [vmem:[%s3541_s11 + $0x130] sm:$0xff]  ;;  %s3789_s15 = scalar_lea.vmem [#allocation9], %s2909_s26  ;;  %s4333_s3 = sld [smem:[#allocation27_spill]] }
  0x6f   : > { %1366 = vmatpush1.msra.mxu1 %v862_v6  ;;  %917 = vmatpush1.msra.mxu0 %v860_v5  ;;  %v854_v12 = vld [vmem:[%s3541_s11 + $0x120] sm:$0xff]  ;;  %v852_v13 = vld [vmem:[%s3541_s11 + $0x110] sm:$0xff]  ;;  %v853_v14 = vld [vmem:[%s3541_s11 + $0x118] sm:$0xff]  ;;  %s2745_s18 = sshll.u32 %s3789_s15, 4  ;;  %s4212_s14 = scalar_lea.sflag [#allocation5], %s292_s29  ;;  %s4204_s18 = int_to_ptr.vmem [resolvable:$true] %s2745_s18 }
  0x70   : > { %1367 = vmatprep.subr.mxu1 %v3298_v0  ;;  %918 = vmatprep.subr.mxu0 %v858_v7  ;;  %v851_v15 = vld [vmem:[%s3541_s11 + $0x108] sm:$0xff]  ;;  %v849_v16 = vld [vmem:[%s3541_s11 + $0xf8] sm:$0xff]  ;;  %v850_v17 = vld [vmem:[%s3541_s11 + $0x100] sm:$0xff]  ;;  %s3299_s0 = smov [#allocation9]  }
  0x71   : > { %1368 = vmatpush1.msra.mxu1 %v859_v8  ;;  %919 = vmatpush1.msra.mxu0 %v857_v9  ;;  %v848_v18 = vld [vmem:[%s3541_s11 + $0xf0] sm:$0xff]  ;;  %v846_v19 = vld [vmem:[%s3541_s11 + $0xe0] sm:$0xff]  ;;  %v847_v20 = vld [vmem:[%s3541_s11 + $0xe8] sm:$0xff]  ;;  %s3144_s23 = sshll.u32 %s3299_s0, 4  ;;  %s3145_s23 = int_to_ptr.vmem [resolvable:$false] %s3144_s23 }
  0x72   : > { %1369 = vmatprep.subr.mxu1 %v3298_v0  ;;  %920 = vmatprep.subr.mxu0 %v855_v10  ;;  %v845_v21 = vld [vmem:[%s3541_s11 + $0xd8] sm:$0xff]  ;;  %v843_v22 = vld [vmem:[%s3541_s11 + $0xc8] sm:$0xff]  ;;  %v844_v23 = vld [vmem:[%s3541_s11 + $0xd0] sm:$0xff]  ;;  %s2737_s7 = smul.u32 3, %s4331_s22  ;;  %s3146_s24 = scalar_lea.vmem %s3145_s23, 49152 }
  0x73   : > { %1370 = vmatpush1.msra.mxu1 %v856_v11  ;;  %921 = vmatpush1.msra.mxu0 %v854_v12  ;;  %v842_v24 = vld [vmem:[%s3541_s11 + $0xc0] sm:$0xff]  ;;  %v840_v25 = vld [vmem:[%s3541_s11 + $0xb0] sm:$0xff]  ;;  %v841_v26 = vld [vmem:[%s3541_s11 + $0xb8] sm:$0xff]  ;;  %s2910_s10 = smul.u32 384, %s4332_s27  ;;  %p3147_p8 = scmp.lt.s32.totalorder %s4204_s18, %s3145_s23 }
  0x74   : > { %1371 = vmatprep.subr.mxu1 %v3298_v0  ;;  %922 = vmatprep.subr.mxu0 %v852_v13  ;;  %v839_v27 = vld [vmem:[%s3541_s11 + $0xa8] sm:$0xff]  ;;  %v837_v28 = vld [vmem:[%s3541_s11 + $0x98] sm:$0xff]  ;;  %v838_v29 = vld [vmem:[%s3541_s11 + $0xa0] sm:$0xff] }
  0x75   : > { %1372 = vmatpush1.msra.mxu1 %v853_v14  ;;  %923 = vmatpush1.msra.mxu0 %v851_v15  ;;  %v836_v30 = vld [vmem:[%s3541_s11 + $0x90] sm:$0xff]  ;;  %v834_v31 = vld [vmem:[%s3541_s11 + $0x80] sm:$0xff]  ;;  %v835_v32 = vld [vmem:[%s3541_s11 + $0x88] sm:$0xff]  ;;  %s2742_s4 = sadd.s32 %s2910_s10, %s2737_s7 }
  0x76   : > { %1373 = vmatprep.subr.mxu1 %v3298_v0  ;;  %924 = vmatprep.subr.mxu0 %v849_v16  ;;  %v833_v33 = vld [vmem:[%s3541_s11 + $0x78] sm:$0xff]  ;;  %v831_v34 = vld [vmem:[%s3541_s11 + $0x68] sm:$0xff]  ;;  %v832_v35 = vld [vmem:[%s3541_s11 + $0x70] sm:$0xff]  ;;  %s2898_s1 = sshll.u32 %s2742_s4, 7 }
  0x77   : > { %1374 = vmatpush1.msra.mxu1 %v850_v17  ;;  %925 = vmatpush1.msra.mxu0 %v848_v18  ;;  %v830_v36 = vld [vmem:[%s3541_s11 + $0x60] sm:$0xff]  ;;  %v828_v37 = vld [vmem:[%s3541_s11 + $0x50] sm:$0xff]  ;;  %v829_v38 = vld [vmem:[%s3541_s11 + $0x58] sm:$0xff]  ;;  %s4201_s12 = scalar_lea.hbm %s4333_s3, %s2898_s1 }
  0x78   : > { %1375 = vmatprep.subr.mxu1 %v3298_v0  ;;  %926 = vmatprep.subr.mxu0 %v846_v19  ;;  %v827_v39 = vld [vmem:[%s3541_s11 + $0x48] sm:$0xff]  ;;  %v825_v40 = vld [vmem:[%s3541_s11 + $0x38] sm:$0xff]  ;;  %v826_v41 = vld [vmem:[%s3541_s11 + $0x40] sm:$0xff] }
  0x79   : > { %1376 = vmatpush1.msra.mxu1 %v847_v20  ;;  %927 = vmatpush1.msra.mxu0 %v845_v21  ;;  %v824_v42 = vld [vmem:[%s3541_s11 + $0x30] sm:$0xff]  ;;  %v822_v43 = vld [vmem:[%s3541_s11 + $0x20] sm:$0xff]  ;;  %v823_v44 = vld [vmem:[%s3541_s11 + $0x28] sm:$0xff] }
  0x7a   : > { %1377 = vmatprep.subr.mxu1 %v3298_v0  ;;  %928 = vmatprep.subr.mxu0 %v843_v22  ;;  %v821_v45 = vld [vmem:[%s3541_s11 + $0x18] sm:$0xff]  ;;  %v819_v46 = vld [vmem:[%s3541_s11 + $0x8] sm:$0xff]  ;;  %v820_v47 = vld [vmem:[%s3541_s11 + $0x10] sm:$0xff] }
  0x7b   : > { %1378 = vmatpush1.msra.mxu1 %v844_v23  ;;  %929 = vmatpush1.msra.mxu0 %v842_v24  ;;  %v818_v48 = vld [vmem:[%s3541_s11] sm:$0xff]  ;;  %v912_v49 = vld [vmem:[%s3541_s11 + $0x2f0] sm:$0xff]  ;;  %v913_v50 = vld [vmem:[%s3541_s11 + $0x2f8] sm:$0xff] }
  0x7c   : > { %1379 = vmatprep.subr.mxu1 %v3298_v0  ;;  %930 = vmatprep.subr.mxu0 %v840_v25  ;;  %v911_v51 = vld [vmem:[%s3541_s11 + $0x2e8] sm:$0xff]  ;;  %v909_v52 = vld [vmem:[%s3541_s11 + $0x2d8] sm:$0xff]  ;;  %v910_v53 = vld [vmem:[%s3541_s11 + $0x2e0] sm:$0xff] }
  0x7d   : > { %1380 = vmatpush1.msra.mxu1 %v841_v26  ;;  %931 = vmatpush1.msra.mxu0 %v839_v27  ;;  %v908_v54 = vld [vmem:[%s3541_s11 + $0x2d0] sm:$0xff]  ;;  %v906_v55 = vld [vmem:[%s3541_s11 + $0x2c0] sm:$0xff]  ;;  %v907_v56 = vld [vmem:[%s3541_s11 + $0x2c8] sm:$0xff] }
  0x7e   : > { %1381 = vmatprep.subr.mxu1 %v3298_v0  ;;  %932 = vmatprep.subr.mxu0 %v837_v28  ;;  %v905_v57 = vld [vmem:[%s3541_s11 + $0x2b8] sm:$0xff]  ;;  %v903_v58 = vld [vmem:[%s3541_s11 + $0x2a8] sm:$0xff]  ;;  %v904_v59 = vld [vmem:[%s3541_s11 + $0x2b0] sm:$0xff] }
  0x7f   : > { %1382 = vmatpush1.msra.mxu1 %v838_v29  ;;  %933 = vmatpush1.msra.mxu0 %v836_v30  ;;  %v902_v60 = vld [vmem:[%s3541_s11 + $0x2a0] sm:$0xff]  ;;  %v900_v61 = vld [vmem:[%s3541_s11 + $0x290] sm:$0xff]  ;;  %v901_v62 = vld [vmem:[%s3541_s11 + $0x298] sm:$0xff] }
  0x80   : > { %1383 = vmatprep.subr.mxu1 %v3298_v0  ;;  %934 = vmatprep.subr.mxu0 %v834_v31  ;;  %v899_v63 = vld [vmem:[%s3541_s11 + $0x288] sm:$0xff]  ;;  %v897_v1 = vld [vmem:[%s3541_s11 + $0x278] sm:$0xff]  ;;  %v898_v2 = vld [vmem:[%s3541_s11 + $0x280] sm:$0xff] }
  0x81   : > { %1384 = vmatpush1.msra.mxu1 %v835_v32  ;;  %935 = vmatpush1.msra.mxu0 %v833_v33  ;;  %v896_v3 = vld [vmem:[%s3541_s11 + $0x270] sm:$0xff]  ;;  %v894_v4 = vld [vmem:[%s3541_s11 + $0x260] sm:$0xff]  ;;  %v895_v5 = vld [vmem:[%s3541_s11 + $0x268] sm:$0xff] }
  0x82   : > { %1385 = vmatprep.subr.mxu1 %v3298_v0  ;;  %936 = vmatprep.subr.mxu0 %v831_v34  ;;  %v893_v6 = vld [vmem:[%s3541_s11 + $0x258] sm:$0xff]  ;;  %v891_v7 = vld [vmem:[%s3541_s11 + $0x248] sm:$0xff]  ;;  %v892_v8 = vld [vmem:[%s3541_s11 + $0x250] sm:$0xff] }
  0x83   : > { %1386 = vmatpush1.msra.mxu1 %v832_v35  ;;  %937 = vmatpush1.msra.mxu0 %v830_v36  ;;  %v890_v9 = vld [vmem:[%s3541_s11 + $0x240] sm:$0xff]  ;;  %v888_v10 = vld [vmem:[%s3541_s11 + $0x230] sm:$0xff]  ;;  %v889_v11 = vld [vmem:[%s3541_s11 + $0x238] sm:$0xff] }
  0x84   : > { %1387 = vmatprep.subr.mxu1 %v3298_v0  ;;  %938 = vmatprep.subr.mxu0 %v828_v37  ;;  %v887_v12 = vld [vmem:[%s3541_s11 + $0x228] sm:$0xff]  ;;  %v885_v13 = vld [vmem:[%s3541_s11 + $0x218] sm:$0xff]  ;;  %v886_v14 = vld [vmem:[%s3541_s11 + $0x220] sm:$0xff] }
  0x85   : > { %1388 = vmatpush1.msra.mxu1 %v829_v38  ;;  %939 = vmatpush1.msra.mxu0 %v827_v39  ;;  %v884_v15 = vld [vmem:[%s3541_s11 + $0x210] sm:$0xff]  ;;  %v882_v16 = vld [vmem:[%s3541_s11 + $0x200] sm:$0xff]  ;;  %v883_v17 = vld [vmem:[%s3541_s11 + $0x208] sm:$0xff] }
  0x86   : > { %1389 = vmatprep.subr.mxu1 %v3298_v0  ;;  %940 = vmatprep.subr.mxu0 %v825_v40  ;;  %v881_v18 = vld [vmem:[%s3541_s11 + $0x1f8] sm:$0xff]  ;;  %v879_v19 = vld [vmem:[%s3541_s11 + $0x1e8] sm:$0xff]  ;;  %v880_v20 = vld [vmem:[%s3541_s11 + $0x1f0] sm:$0xff] }
  0x87   : > { %1390 = vmatpush1.msra.mxu1 %v826_v41  ;;  %941 = vmatpush1.msra.mxu0 %v824_v42  ;;  %v878_v21 = vld [vmem:[%s3541_s11 + $0x1e0] sm:$0xff]  ;;  %v876_v22 = vld [vmem:[%s3541_s11 + $0x1d0] sm:$0xff]  ;;  %v877_v23 = vld [vmem:[%s3541_s11 + $0x1d8] sm:$0xff] }
  0x88   : > { %1391 = vmatprep.subr.mxu1 %v3298_v0  ;;  %942 = vmatprep.subr.mxu0 %v822_v43  ;;  %v875_v24 = vld [vmem:[%s3541_s11 + $0x1c8] sm:$0xff]  ;;  %v873_v25 = vld [vmem:[%s3541_s11 + $0x1b8] sm:$0xff]  ;;  %v874_v26 = vld [vmem:[%s3541_s11 + $0x1c0] sm:$0xff] }
  0x89   : > { %1392 = vmatpush1.msra.mxu1 %v823_v44  ;;  %943 = vmatpush1.msra.mxu0 %v821_v45  ;;  %v872_v27 = vld [vmem:[%s3541_s11 + $0x1b0] sm:$0xff]  ;;  %v870_v28 = vld [vmem:[%s3541_s11 + $0x1a0] sm:$0xff]  ;;  %v871_v29 = vld [vmem:[%s3541_s11 + $0x1a8] sm:$0xff] }
  0x8a   : > { %1393 = vmatprep.subr.mxu1 %v3298_v0  ;;  %944 = vmatprep.subr.mxu0 %v819_v46  ;;  %v869_v30 = vld [vmem:[%s3541_s11 + $0x198] sm:$0xff]  ;;  %v867_v31 = vld [vmem:[%s3541_s11 + $0x188] sm:$0xff]  ;;  %v866_v33 = vld [vmem:[%s3541_s11 + $0x180] sm:$0xff] }
  0x8b   : > { %1394 = vmatpush1.msra.mxu1 %v820_v47  ;;  %945 = vmatpush1.msra.mxu0 %v818_v48  ;;  %v691_v32 = vld [vmem:[%s3531_s20 + $0x8] sm:$0xff]  ;;  %v868_v34 = vld [vmem:[%s3541_s11 + $0x190] sm:$0xff]  ;;  %v690_v35 = vld [vmem:[%s3531_s20] sm:$0xff] }
  0x8c   : > { %1395 = vmatprep.subr.mxu1 %v3298_v0  ;;  %946 = vmatprep.subr.mxu0 %v912_v49  ;;  %v693_v36 = vld [vmem:[%s3531_s20 + $0x18] sm:$0xff]  ;;  %v692_v37 = vld [vmem:[%s3531_s20 + $0x10] sm:$0xff]  ;;  %v695_v38 = vld [vmem:[%s3531_s20 + $0x28] sm:$0xff] }
  0x8d   : > { %1396 = vmatpush2.msra.mxu1 %v913_v50  ;;  %947 = vmatpush2.msra.mxu0 %v911_v51  ;;  %v697_v39 = vld [vmem:[%s3531_s20 + $0x38] sm:$0xff]  ;;  %v696_v40 = vld [vmem:[%s3531_s20 + $0x30] sm:$0xff]  ;;  %v699_v41 = vld [vmem:[%s3531_s20 + $0x48] sm:$0xff] }
  0x8e   : > { %1397 = vmatprep.subr.mxu1 %v3298_v0  ;;  %948 = vmatprep.subr.mxu0 %v909_v52  ;;  %v698_v42 = vld [vmem:[%s3531_s20 + $0x40] sm:$0xff]  ;;  %v701_v43 = vld [vmem:[%s3531_s20 + $0x58] sm:$0xff]  ;;  %v700_v44 = vld [vmem:[%s3531_s20 + $0x50] sm:$0xff] }
  0x8f   : > { %1398 = vmatpush2.msra.mxu1 %v910_v53  ;;  %949 = vmatpush2.msra.mxu0 %v908_v54  ;;  %v703_v45 = vld [vmem:[%s3531_s20 + $0x68] sm:$0xff]  ;;  %v702_v46 = vld [vmem:[%s3531_s20 + $0x60] sm:$0xff]  ;;  %v705_v47 = vld [vmem:[%s3531_s20 + $0x78] sm:$0xff] }
  0x90   : > { %1399 = vmatprep.subr.mxu1 %v3298_v0  ;;  %950 = vmatprep.subr.mxu0 %v906_v55  ;;  %v704_v48 = vld [vmem:[%s3531_s20 + $0x70] sm:$0xff]  ;;  %v707_v49 = vld [vmem:[%s3531_s20 + $0x88] sm:$0xff]  ;;  %v706_v50 = vld [vmem:[%s3531_s20 + $0x80] sm:$0xff] }
  0x91   : > { %1400 = vmatpush2.msra.mxu1 %v907_v56  ;;  %951 = vmatpush2.msra.mxu0 %v905_v57  ;;  %v709_v51 = vld [vmem:[%s3531_s20 + $0x98] sm:$0xff]  ;;  %v708_v52 = vld [vmem:[%s3531_s20 + $0x90] sm:$0xff]  ;;  %v711_v53 = vld [vmem:[%s3531_s20 + $0xa8] sm:$0xff] }
  0x92   : > { %1401 = vmatprep.subr.mxu1 %v3298_v0  ;;  %952 = vmatprep.subr.mxu0 %v903_v58  ;;  %v710_v54 = vld [vmem:[%s3531_s20 + $0xa0] sm:$0xff]  ;;  %v713_v55 = vld [vmem:[%s3531_s20 + $0xb8] sm:$0xff]  ;;  %v712_v56 = vld [vmem:[%s3531_s20 + $0xb0] sm:$0xff] }
  0x93   : > { %1402 = vmatpush2.msra.mxu1 %v904_v59  ;;  %953 = vmatpush2.msra.mxu0 %v902_v60  ;;  %v715_v57 = vld [vmem:[%s3531_s20 + $0xc8] sm:$0xff]  ;;  %v714_v58 = vld [vmem:[%s3531_s20 + $0xc0] sm:$0xff]  ;;  %v717_v59 = vld [vmem:[%s3531_s20 + $0xd8] sm:$0xff] }
  0x94   : > { %1403 = vmatprep.subr.mxu1 %v3298_v0  ;;  %954 = vmatprep.subr.mxu0 %v900_v61  ;;  %v716_v60 = vld [vmem:[%s3531_s20 + $0xd0] sm:$0xff]  ;;  %v719_v61 = vld [vmem:[%s3531_s20 + $0xe8] sm:$0xff] }
  0x95   : > { %1404 = vmatpush2.msra.mxu1 %v901_v62  ;;  %955 = vmatpush2.msra.mxu0 %v899_v63  ;;  %v718_v62 = vld [vmem:[%s3531_s20 + $0xe0] sm:$0xff]  ;;  %v721_v63 = vld [vmem:[%s3531_s20 + $0xf8] sm:$0xff] }
  0x96   : > { %1405 = vmatprep.subr.mxu1 %v3298_v0  ;;  %956 = vmatprep.subr.mxu0 %v897_v1  ;;  %v720_v1 = vld [vmem:[%s3531_s20 + $0xf0] sm:$0xff] }
  0x97   : > { %1406 = vmatpush2.msra.mxu1 %v898_v2  ;;  %957 = vmatpush2.msra.mxu0 %v896_v3  ;;  %v723_v2 = vld [vmem:[%s3531_s20 + $0x108] sm:$0xff]  ;;  %v722_v3 = vld [vmem:[%s3531_s20 + $0x100] sm:$0xff] }
  0x98   : > { %1407 = vmatprep.subr.mxu1 %v3298_v0  ;;  %958 = vmatprep.subr.mxu0 %v894_v4  ;;  %v725_v4 = vld [vmem:[%s3531_s20 + $0x118] sm:$0xff] }
  0x99   : > { %1408 = vmatpush2.msra.mxu1 %v895_v5  ;;  %959 = vmatpush2.msra.mxu0 %v893_v6  ;;  %v724_v5 = vld [vmem:[%s3531_s20 + $0x110] sm:$0xff]  ;;  %v727_v6 = vld [vmem:[%s3531_s20 + $0x128] sm:$0xff] }
  0x9a   : > { %1409 = vmatprep.subr.mxu1 %v3298_v0  ;;  %960 = vmatprep.subr.mxu0 %v891_v7  ;;  %v726_v7 = vld [vmem:[%s3531_s20 + $0x120] sm:$0xff] }
  0x9b   : > { %1410 = vmatpush2.msra.mxu1 %v892_v8  ;;  %961 = vmatpush2.msra.mxu0 %v890_v9  ;;  %v729_v8 = vld [vmem:[%s3531_s20 + $0x138] sm:$0xff]  ;;  %v728_v9 = vld [vmem:[%s3531_s20 + $0x130] sm:$0xff] }
  0x9c   : > { %1411 = vmatprep.subr.mxu1 %v3298_v0  ;;  %962 = vmatprep.subr.mxu0 %v888_v10  ;;  %v731_v10 = vld [vmem:[%s3531_s20 + $0x148] sm:$0xff] }
  0x9d   : > { %1412 = vmatpush2.msra.mxu1 %v889_v11  ;;  %963 = vmatpush2.msra.mxu0 %v887_v12  ;;  %v730_v11 = vld [vmem:[%s3531_s20 + $0x140] sm:$0xff]  ;;  %v733_v12 = vld [vmem:[%s3531_s20 + $0x158] sm:$0xff] }
  0x9e   : > { %1413 = vmatprep.subr.mxu1 %v3298_v0  ;;  %964 = vmatprep.subr.mxu0 %v885_v13  ;;  %v732_v13 = vld [vmem:[%s3531_s20 + $0x150] sm:$0xff] }
  0x9f   : > { %1414 = vmatpush2.msra.mxu1 %v886_v14  ;;  %965 = vmatpush2.msra.mxu0 %v884_v15  ;;  %v735_v14 = vld [vmem:[%s3531_s20 + $0x168] sm:$0xff]  ;;  %v734_v15 = vld [vmem:[%s3531_s20 + $0x160] sm:$0xff] }
  0xa0   : > { %1415 = vmatprep.subr.mxu1 %v3298_v0  ;;  %966 = vmatprep.subr.mxu0 %v882_v16  ;;  %v737_v16 = vld [vmem:[%s3531_s20 + $0x178] sm:$0xff] }
  0xa1   : > { %1416 = vmatpush2.msra.mxu1 %v883_v17  ;;  %967 = vmatpush2.msra.mxu0 %v881_v18  ;;  %v736_v17 = vld [vmem:[%s3531_s20 + $0x170] sm:$0xff]  ;;  %v739_v18 = vld [vmem:[%s3531_s20 + $0x188] sm:$0xff] }
  0xa2   : > { %1417 = vmatprep.subr.mxu1 %v3298_v0  ;;  %968 = vmatprep.subr.mxu0 %v879_v19  ;;  %v738_v19 = vld [vmem:[%s3531_s20 + $0x180] sm:$0xff] }
  0xa3   : > { %1418 = vmatpush2.msra.mxu1 %v880_v20  ;;  %969 = vmatpush2.msra.mxu0 %v878_v21  ;;  %v741_v20 = vld [vmem:[%s3531_s20 + $0x198] sm:$0xff]  ;;  %v740_v21 = vld [vmem:[%s3531_s20 + $0x190] sm:$0xff] }
  0xa4   : > { %1419 = vmatprep.subr.mxu1 %v3298_v0  ;;  %970 = vmatprep.subr.mxu0 %v876_v22  ;;  %v743_v22 = vld [vmem:[%s3531_s20 + $0x1a8] sm:$0xff] }
  0xa5   : > { %1420 = vmatpush2.msra.mxu1 %v877_v23  ;;  %971 = vmatpush2.msra.mxu0 %v875_v24  ;;  %v742_v23 = vld [vmem:[%s3531_s20 + $0x1a0] sm:$0xff]  ;;  %v745_v24 = vld [vmem:[%s3531_s20 + $0x1b8] sm:$0xff] }
  0xa6   : > { %1421 = vmatprep.subr.mxu1 %v3298_v0  ;;  %972 = vmatprep.subr.mxu0 %v873_v25  ;;  %v744_v25 = vld [vmem:[%s3531_s20 + $0x1b0] sm:$0xff] }
  0xa7   : > { %1422 = vmatpush2.msra.mxu1 %v874_v26  ;;  %973 = vmatpush2.msra.mxu0 %v872_v27  ;;  %v747_v26 = vld [vmem:[%s3531_s20 + $0x1c8] sm:$0xff]  ;;  %v746_v27 = vld [vmem:[%s3531_s20 + $0x1c0] sm:$0xff] }
  0xa8   : > { %1423 = vmatprep.subr.mxu1 %v3298_v0  ;;  %974 = vmatprep.subr.mxu0 %v870_v28  ;;  %v749_v28 = vld [vmem:[%s3531_s20 + $0x1d8] sm:$0xff] }
  0xa9   : > { %1424 = vmatpush2.msra.mxu1 %v871_v29  ;;  %975 = vmatpush2.msra.mxu0 %v869_v30  ;;  %v748_v29 = vld [vmem:[%s3531_s20 + $0x1d0] sm:$0xff]  ;;  %v751_v30 = vld [vmem:[%s3531_s20 + $0x1e8] sm:$0xff] }
  0xaa   : > { %1425 = vmatprep.subr.mxu1 %v3298_v0  ;;  %976 = vmatprep.subr.mxu0 %v867_v31  ;;  %v694_v0 = vld [vmem:[%s3531_s20 + $0x20] sm:$0xff] }
  0xab   : > { %978 = vmatprep.mubr.f32.mxu0 %v691_v32  ;;  %977 = vmatpush2.msra.mxu0 %v866_v33  ;;  %v750_v31 = vld [vmem:[%s3531_s20 + $0x1e0] sm:$0xff]  ;;  %v752_v33 = vld [vmem:[%s3531_s20 + $0x1f0] sm:$0xff] }
  0xac   : > { %1426 = vmatpush2.msra.mxu1 %v868_v34  ;;  %1427 = vmatprep.mubr.f32.mxu1 %v691_v32  ;;  %v753_v32 = vld [vmem:[%s3531_s20 + $0x1f8] sm:$0xff]  ;;  %v755_v34 = vld [vmem:[%s3531_s20 + $0x208] sm:$0xff] }
  0xad   : > { %979 = vmatmul.mubr.f32.vlgmr.msra.gmra.mxu0 %v690_v35  ;;  %1428 = vmatmul.mubr.f32.vlgmr.msra.gmra.mxu1 %v690_v35  ;;  %v754_v35 = vld [vmem:[%s3531_s20 + $0x200] sm:$0xff] }
  0xae   : > { %984 = vmatprep.mubr.f32.mxu0 %v693_v36  ;;  %1432 = vmatprep.mubr.f32.mxu1 %v693_v36  ;;  %v757_v36 = vld [vmem:[%s3531_s20 + $0x218] sm:$0xff] }
  0xb1   : > { %985 = vmatmul.mubr.f32.gmra.mxu0 %v692_v37  ;;  %1433 = vmatmul.mubr.f32.gmra.mxu1 %v692_v37  ;;  %v756_v37 = vld [vmem:[%s3531_s20 + $0x210] sm:$0xff] }
  0xb2   : > { %990 = vmatprep.mubr.f32.mxu0 %v695_v38  ;;  %1437 = vmatprep.mubr.f32.mxu1 %v695_v38  ;;  %v759_v38 = vld [vmem:[%s3531_s20 + $0x228] sm:$0xff] }
  0xb5   : > { %991 = vmatmul.mubr.f32.gmra.mxu0 %v694_v0  ;;  %1438 = vmatmul.mubr.f32.gmra.mxu1 %v694_v0  ;;  %v758_v0 = vld [vmem:[%s3531_s20 + $0x220] sm:$0xff] }
  0xb6   : > { %996 = vmatprep.mubr.f32.mxu0 %v697_v39  ;;  %1442 = vmatprep.mubr.f32.mxu1 %v697_v39  ;;  %v761_v39 = vld [vmem:[%s3531_s20 + $0x238] sm:$0xff] }
  0xb9   : > { %997 = vmatmul.mubr.f32.gmra.mxu0 %v696_v40  ;;  %1443 = vmatmul.mubr.f32.gmra.mxu1 %v696_v40  ;;  %v760_v40 = vld [vmem:[%s3531_s20 + $0x230] sm:$0xff] }
  0xba   : > { %1002 = vmatprep.mubr.f32.mxu0 %v699_v41  ;;  %1447 = vmatprep.mubr.f32.mxu1 %v699_v41  ;;  %v763_v41 = vld [vmem:[%s3531_s20 + $0x248] sm:$0xff] }
  0xbd   : > { %1003 = vmatmul.mubr.f32.gmra.mxu0 %v698_v42  ;;  %1448 = vmatmul.mubr.f32.gmra.mxu1 %v698_v42  ;;  %v762_v42 = vld [vmem:[%s3531_s20 + $0x240] sm:$0xff] }
  0xbe   : > { %1008 = vmatprep.mubr.f32.mxu0 %v701_v43  ;;  %1452 = vmatprep.mubr.f32.mxu1 %v701_v43  ;;  %v765_v43 = vld [vmem:[%s3531_s20 + $0x258] sm:$0xff] }
  0xc1   : > { %1009 = vmatmul.mubr.f32.gmra.mxu0 %v700_v44  ;;  %1453 = vmatmul.mubr.f32.gmra.mxu1 %v700_v44  ;;  %v764_v44 = vld [vmem:[%s3531_s20 + $0x250] sm:$0xff] }
  0xc2   : > { %1014 = vmatprep.mubr.f32.mxu0 %v703_v45  ;;  %1457 = vmatprep.mubr.f32.mxu1 %v703_v45  ;;  %v767_v45 = vld [vmem:[%s3531_s20 + $0x268] sm:$0xff] }
  0xc5   : > { %1015 = vmatmul.mubr.f32.gmra.mxu0 %v702_v46  ;;  %1458 = vmatmul.mubr.f32.gmra.mxu1 %v702_v46  ;;  %v766_v46 = vld [vmem:[%s3531_s20 + $0x260] sm:$0xff] }
  0xc6   : > { %1020 = vmatprep.mubr.f32.mxu0 %v705_v47  ;;  %1462 = vmatprep.mubr.f32.mxu1 %v705_v47  ;;  %v769_v47 = vld [vmem:[%s3531_s20 + $0x278] sm:$0xff] }
  0xc9   : > { %1021 = vmatmul.mubr.f32.gmra.mxu0 %v704_v48  ;;  %1463 = vmatmul.mubr.f32.gmra.mxu1 %v704_v48  ;;  %v768_v48 = vld [vmem:[%s3531_s20 + $0x270] sm:$0xff] }
  0xca   : > { %1026 = vmatprep.mubr.f32.mxu0 %v707_v49  ;;  %1467 = vmatprep.mubr.f32.mxu1 %v707_v49  ;;  %v771_v49 = vld [vmem:[%s3531_s20 + $0x288] sm:$0xff] }
  0xcd   : > { %1027 = vmatmul.mubr.f32.gmra.mxu0 %v706_v50  ;;  %1468 = vmatmul.mubr.f32.gmra.mxu1 %v706_v50  ;;  %v770_v50 = vld [vmem:[%s3531_s20 + $0x280] sm:$0xff] }
  0xce   : > { %1032 = vmatprep.mubr.f32.mxu0 %v709_v51  ;;  %1472 = vmatprep.mubr.f32.mxu1 %v709_v51  ;;  %v773_v51 = vld [vmem:[%s3531_s20 + $0x298] sm:$0xff] }
  0xd1   : > { %1033 = vmatmul.mubr.f32.gmra.mxu0 %v708_v52  ;;  %1473 = vmatmul.mubr.f32.gmra.mxu1 %v708_v52  ;;  %v772_v52 = vld [vmem:[%s3531_s20 + $0x290] sm:$0xff] }
  0xd2   : > { %1038 = vmatprep.mubr.f32.mxu0 %v711_v53  ;;  %1477 = vmatprep.mubr.f32.mxu1 %v711_v53  ;;  %v775_v53 = vld [vmem:[%s3531_s20 + $0x2a8] sm:$0xff] }
  0xd5   : > { %1039 = vmatmul.mubr.f32.gmra.mxu0 %v710_v54  ;;  %1478 = vmatmul.mubr.f32.gmra.mxu1 %v710_v54  ;;  %v774_v54 = vld [vmem:[%s3531_s20 + $0x2a0] sm:$0xff] }
  0xd6   : > { %1044 = vmatprep.mubr.f32.mxu0 %v713_v55  ;;  %1482 = vmatprep.mubr.f32.mxu1 %v713_v55  ;;  %v777_v55 = vld [vmem:[%s3531_s20 + $0x2b8] sm:$0xff] }
  0xd9   : > { %1045 = vmatmul.mubr.f32.gmra.mxu0 %v712_v56  ;;  %1483 = vmatmul.mubr.f32.gmra.mxu1 %v712_v56  ;;  %v776_v56 = vld [vmem:[%s3531_s20 + $0x2b0] sm:$0xff] }
  0xda   : > { %1050 = vmatprep.mubr.f32.mxu0 %v715_v57  ;;  %1487 = vmatprep.mubr.f32.mxu1 %v715_v57  ;;  %v779_v57 = vld [vmem:[%s3531_s20 + $0x2c8] sm:$0xff] }
  0xdd   : > { %1051 = vmatmul.mubr.f32.gmra.mxu0 %v714_v58  ;;  %1488 = vmatmul.mubr.f32.gmra.mxu1 %v714_v58  ;;  %v778_v58 = vld [vmem:[%s3531_s20 + $0x2c0] sm:$0xff] }
  0xde   : > { %1056 = vmatprep.mubr.f32.mxu0 %v717_v59  ;;  %1492 = vmatprep.mubr.f32.mxu1 %v717_v59  ;;  %v781_v59 = vld [vmem:[%s3531_s20 + $0x2d8] sm:$0xff] }
  0xe1   : > { %1057 = vmatmul.mubr.f32.gmra.mxu0 %v716_v60  ;;  %1493 = vmatmul.mubr.f32.gmra.mxu1 %v716_v60  ;;  %v780_v60 = vld [vmem:[%s3531_s20 + $0x2d0] sm:$0xff] }
  0xe2   : > { %1062 = vmatprep.mubr.f32.mxu0 %v719_v61  ;;  %1497 = vmatprep.mubr.f32.mxu1 %v719_v61  ;;  %v2329_v61 = vlaneseq }
  0xe5   : > { %1063 = vmatmul.mubr.f32.gmra.mxu0 %v718_v62  ;;  %1498 = vmatmul.mubr.f32.gmra.mxu1 %v718_v62  ;;  %v783_v62 = vld [vmem:[%s3531_s20 + $0x2e8] sm:$0xff] }
  0xe6   : > { %1068 = vmatprep.mubr.f32.mxu0 %v721_v63  ;;  %1502 = vmatprep.mubr.f32.mxu1 %v721_v63  ;;  %v782_v63 = vld [vmem:[%s3531_s20 + $0x2e0] sm:$0xff] }
  0xe9   : > { %1069 = vmatmul.mubr.f32.gmra.mxu0 %v720_v1  ;;  %1503 = vmatmul.mubr.f32.gmra.mxu1 %v720_v1  ;;  %v2330_v1 = vshrl.u32 %v2329_v61, 7  ;;  %v798_v61 = vld [vmem:[%s3531_s20 + $0x360] sm:$0xff] }
  0xea   : > { %1074 = vmatprep.mubr.f32.mxu0 %v723_v2  ;;  %1507 = vmatprep.mubr.f32.mxu1 %v723_v2  ;;  %v785_v2 = vld [vmem:[%s3531_s20 + $0x2f8] sm:$0xff] }
  0xed   : > { %1075 = vmatmul.mubr.f32.gmra.mxu0 %v722_v3  ;;  %1508 = vmatmul.mubr.f32.gmra.mxu1 %v722_v3  ;;  %v784_v3 = vld [vmem:[%s3531_s20 + $0x2f0] sm:$0xff] }
  0xee   : > { %1080 = vmatprep.mubr.f32.mxu0 %v725_v4  ;;  %1512 = vmatprep.mubr.f32.mxu1 %v725_v4  ;;  %v2331_v4 = vsub.s32 0, %v2330_v1 }
  0xf1   : > { %1081 = vmatmul.mubr.f32.gmra.mxu0 %v724_v5  ;;  %1513 = vmatmul.mubr.f32.gmra.mxu1 %v724_v5  ;;  %v787_v5 = vld [vmem:[%s3531_s20 + $0x308] sm:$0xff] }
  0xf2   : > { %1086 = vmatprep.mubr.f32.mxu0 %v727_v6  ;;  %1517 = vmatprep.mubr.f32.mxu1 %v727_v6  ;;  %v2327_v6 = vld [vmem:[%s262_s30] sm:$0x7] }
  0xf5   : > { %1087 = vmatmul.mubr.f32.gmra.mxu0 %v726_v7  ;;  %1518 = vmatmul.mubr.f32.gmra.mxu1 %v726_v7  ;;  %v2339_v7 = vsub.s32 2, %v2330_v1 }
  0xf6   : > { %1092 = vmatprep.mubr.f32.mxu0 %v729_v8  ;;  %1522 = vmatprep.mubr.f32.mxu1 %v729_v8  ;;  %v2335_v8 = vsub.s32 1, %v2330_v1  ;;  %v801_v1 = vld [vmem:[%s3531_s20 + $0x378] sm:$0xff] }
  0xf9   : > { %1093 = vmatmul.mubr.f32.gmra.mxu0 %v728_v9  ;;  %1523 = vmatmul.mubr.f32.gmra.mxu1 %v728_v9  ;;  %v3777_v9 = vrot.slane %v2327_v6, %v2331_v4 }
  0xfa   : > { %1098 = vmatprep.mubr.f32.mxu0 %v731_v10  ;;  %1527 = vmatprep.mubr.f32.mxu1 %v731_v10  ;;  %v786_v10 = vld [vmem:[%s3531_s20 + $0x300] sm:$0xff] }
  0xfd   : > { %1099 = vmatmul.mubr.f32.gmra.mxu0 %v730_v11  ;;  %1528 = vmatmul.mubr.f32.gmra.mxu1 %v730_v11  ;;  %v3780_v11 = vrot.slane %v2327_v6, %v2339_v7  ;;  %v800_v7 = vld [vmem:[%s3531_s20 + $0x370] sm:$0xff] }
  0xfe   : > { %1104 = vmatprep.mubr.f32.mxu0 %v733_v12  ;;  %1532 = vmatprep.mubr.f32.mxu1 %v733_v12  ;;  %v789_v12 = vld [vmem:[%s3531_s20 + $0x318] sm:$0xff] }
 0x101   : > { %1105 = vmatmul.mubr.f32.gmra.mxu0 %v732_v13  ;;  %1533 = vmatmul.mubr.f32.gmra.mxu1 %v732_v13  ;;  %v3783_v13 = vrot.slane %v2327_v6, %v2335_v8 }
 0x102   : > { %1110 = vmatprep.mubr.f32.mxu0 %v735_v14  ;;  %1537 = vmatprep.mubr.f32.mxu1 %v735_v14 }
 0x105   : > { %1111 = vmatmul.mubr.f32.gmra.mxu0 %v734_v15  ;;  %1538 = vmatmul.mubr.f32.gmra.mxu1 %v734_v15 }
 0x106   : > { %1116 = vmatprep.mubr.f32.mxu0 %v737_v16  ;;  %1542 = vmatprep.mubr.f32.mxu1 %v737_v16 }
 0x109   : > { %1117 = vmatmul.mubr.f32.gmra.mxu0 %v736_v17  ;;  %1543 = vmatmul.mubr.f32.gmra.mxu1 %v736_v17  ;;  %v788_v17 = vld [vmem:[%s3531_s20 + $0x310] sm:$0xff] }
 0x10a   : > { %1122 = vmatprep.mubr.f32.mxu0 %v739_v18  ;;  %1547 = vmatprep.mubr.f32.mxu1 %v739_v18 }
 0x10d   : > { %1123 = vmatmul.mubr.f32.gmra.mxu0 %v738_v19  ;;  %1548 = vmatmul.mubr.f32.gmra.mxu1 %v738_v19 }
 0x10e   : > { %1128 = vmatprep.mubr.f32.mxu0 %v741_v20  ;;  %1552 = vmatprep.mubr.f32.mxu1 %v741_v20  ;;  %v791_v20 = vld [vmem:[%s3531_s20 + $0x328] sm:$0xff] }
 0x111   : > { %1129 = vmatmul.mubr.f32.gmra.mxu0 %v740_v21  ;;  %1553 = vmatmul.mubr.f32.gmra.mxu1 %v740_v21 }
 0x112   : > { %1134 = vmatprep.mubr.f32.mxu0 %v743_v22  ;;  %1557 = vmatprep.mubr.f32.mxu1 %v743_v22 }
 0x115   : > { %1135 = vmatmul.mubr.f32.gmra.mxu0 %v742_v23  ;;  %1558 = vmatmul.mubr.f32.gmra.mxu1 %v742_v23 }
 0x116   : > { %1140 = vmatprep.mubr.f32.mxu0 %v745_v24  ;;  %1562 = vmatprep.mubr.f32.mxu1 %v745_v24 }
 0x119   : > { %1141 = vmatmul.mubr.f32.gmra.mxu0 %v744_v25  ;;  %1563 = vmatmul.mubr.f32.gmra.mxu1 %v744_v25 }
 0x11a   : > { %1146 = vmatprep.mubr.f32.mxu0 %v747_v26  ;;  %1567 = vmatprep.mubr.f32.mxu1 %v747_v26  ;;  %v790_v26 = vld [vmem:[%s3531_s20 + $0x320] sm:$0xff] }
 0x11d   : > { %1147 = vmatmul.mubr.f32.gmra.mxu0 %v746_v27  ;;  %1568 = vmatmul.mubr.f32.gmra.mxu1 %v746_v27 }
 0x11e   : > { %1152 = vmatprep.mubr.f32.mxu0 %v749_v28  ;;  %1572 = vmatprep.mubr.f32.mxu1 %v749_v28 }
 0x121   : > { %1153 = vmatmul.mubr.f32.gmra.mxu0 %v748_v29  ;;  %1573 = vmatmul.mubr.f32.gmra.mxu1 %v748_v29  ;;  %v793_v29 = vld [vmem:[%s3531_s20 + $0x338] sm:$0xff] }
 0x122   : > { %1158 = vmatprep.mubr.f32.mxu0 %v751_v30  ;;  %1577 = vmatprep.mubr.f32.mxu1 %v751_v30 }
 0x125   : > { %1159 = vmatmul.mubr.f32.gmra.mxu0 %v750_v31  ;;  %1578 = vmatmul.mubr.f32.gmra.mxu1 %v750_v31 }
 0x126   : > { %1164 = vmatprep.mubr.f32.mxu0 %v753_v32  ;;  %1582 = vmatprep.mubr.f32.mxu1 %v753_v32 }
 0x129   : > { %1165 = vmatmul.mubr.f32.gmra.mxu0 %v752_v33  ;;  %1583 = vmatmul.mubr.f32.gmra.mxu1 %v752_v33 }
 0x12a   : > { %1170 = vmatprep.mubr.f32.mxu0 %v755_v34  ;;  %1587 = vmatprep.mubr.f32.mxu1 %v755_v34 }
 0x12d   : > { %1171 = vmatmul.mubr.f32.gmra.mxu0 %v754_v35  ;;  %1588 = vmatmul.mubr.f32.gmra.mxu1 %v754_v35  ;;  %v792_v35 = vld [vmem:[%s3531_s20 + $0x330] sm:$0xff] }
 0x12e   : > { %1176 = vmatprep.mubr.f32.mxu0 %v757_v36  ;;  %1592 = vmatprep.mubr.f32.mxu1 %v757_v36 }
 0x131   : > { %1177 = vmatmul.mubr.f32.gmra.mxu0 %v756_v37  ;;  %1593 = vmatmul.mubr.f32.gmra.mxu1 %v756_v37 }
 0x132   : > { %1182 = vmatprep.mubr.f32.mxu0 %v759_v38  ;;  %1597 = vmatprep.mubr.f32.mxu1 %v759_v38  ;;  %v795_v38 = vld [vmem:[%s3531_s20 + $0x348] sm:$0xff] }
 0x135   : > { %1183 = vmatmul.mubr.f32.gmra.mxu0 %v758_v0  ;;  %1598 = vmatmul.mubr.f32.gmra.mxu1 %v758_v0 }
 0x136   : > { %1188 = vmatprep.mubr.f32.mxu0 %v761_v39  ;;  %1602 = vmatprep.mubr.f32.mxu1 %v761_v39 }
 0x139   : > { %1189 = vmatmul.mubr.f32.gmra.mxu0 %v760_v40  ;;  %1603 = vmatmul.mubr.f32.gmra.mxu1 %v760_v40 }
 0x13a   : > { %1194 = vmatprep.mubr.f32.mxu0 %v763_v41  ;;  %1607 = vmatprep.mubr.f32.mxu1 %v763_v41 }
 0x13d   : > { %1195 = vmatmul.mubr.f32.gmra.mxu0 %v762_v42  ;;  %1608 = vmatmul.mubr.f32.gmra.mxu1 %v762_v42 }
 0x13e   : > { %1200 = vmatprep.mubr.f32.mxu0 %v765_v43  ;;  %1612 = vmatprep.mubr.f32.mxu1 %v765_v43  ;;  %v794_v43 = vld [vmem:[%s3531_s20 + $0x340] sm:$0xff] }
 0x141   : > { %1201 = vmatmul.mubr.f32.gmra.mxu0 %v764_v44  ;;  %1613 = vmatmul.mubr.f32.gmra.mxu1 %v764_v44 }
 0x142   : > { %1206 = vmatprep.mubr.f32.mxu0 %v767_v45  ;;  %1617 = vmatprep.mubr.f32.mxu1 %v767_v45 }
 0x145   : > { %1207 = vmatmul.mubr.f32.gmra.mxu0 %v766_v46  ;;  %1618 = vmatmul.mubr.f32.gmra.mxu1 %v766_v46  ;;  %v797_v46 = vld [vmem:[%s3531_s20 + $0x358] sm:$0xff] }
 0x146   : > { %1212 = vmatprep.mubr.f32.mxu0 %v769_v47  ;;  %1622 = vmatprep.mubr.f32.mxu1 %v769_v47 }
 0x149   : > { %1213 = vmatmul.mubr.f32.gmra.mxu0 %v768_v48  ;;  %1623 = vmatmul.mubr.f32.gmra.mxu1 %v768_v48 }
 0x14a   : > { %1218 = vmatprep.mubr.f32.mxu0 %v771_v49  ;;  %1627 = vmatprep.mubr.f32.mxu1 %v771_v49 }
 0x14d   : > { %1219 = vmatmul.mubr.f32.gmra.mxu0 %v770_v50  ;;  %1628 = vmatmul.mubr.f32.gmra.mxu1 %v770_v50 }
 0x14e   : > { %1224 = vmatprep.mubr.f32.mxu0 %v773_v51  ;;  %1632 = vmatprep.mubr.f32.mxu1 %v773_v51 }
 0x151   : > { %1225 = vmatmul.mubr.f32.gmra.mxu0 %v772_v52  ;;  %1633 = vmatmul.mubr.f32.gmra.mxu1 %v772_v52  ;;  %v796_v52 = vld [vmem:[%s3531_s20 + $0x350] sm:$0xff] }
 0x152   : > { %1230 = vmatprep.mubr.f32.mxu0 %v775_v53  ;;  %1637 = vmatprep.mubr.f32.mxu1 %v775_v53 }
 0x155   : > { %1231 = vmatmul.mubr.f32.gmra.mxu0 %v774_v54  ;;  %1638 = vmatmul.mubr.f32.gmra.mxu1 %v774_v54 }
 0x156   : > { %1236 = vmatprep.mubr.f32.mxu0 %v777_v55  ;;  %1642 = vmatprep.mubr.f32.mxu1 %v777_v55  ;;  %v799_v55 = vld [vmem:[%s3531_s20 + $0x368] sm:$0xff] }
 0x159   : > { %1237 = vmatmul.mubr.f32.gmra.mxu0 %v776_v56  ;;  %1643 = vmatmul.mubr.f32.gmra.mxu1 %v776_v56 }
 0x15a   : > { %1242 = vmatprep.mubr.f32.mxu0 %v779_v57  ;;  %1647 = vmatprep.mubr.f32.mxu1 %v779_v57 }
 0x15d   : > { %1243 = vmatmul.mubr.f32.gmra.mxu0 %v778_v58  ;;  %1648 = vmatmul.mubr.f32.gmra.mxu1 %v778_v58 }
 0x15e   : > { %1248 = vmatprep.mubr.f32.mxu0 %v781_v59  ;;  %1652 = vmatprep.mubr.f32.mxu1 %v781_v59 }
 0x161   : > { %1249 = vmatmul.mubr.f32.gmra.mxu0 %v780_v60  ;;  %1653 = vmatmul.mubr.f32.gmra.mxu1 %v780_v60 }
 0x162   : > { %1254 = vmatprep.mubr.f32.mxu0 %v783_v62  ;;  %1657 = vmatprep.mubr.f32.mxu1 %v783_v62 }
 0x165   : > { %1255 = vmatmul.mubr.f32.gmra.mxu0 %v782_v63  ;;  %1658 = vmatmul.mubr.f32.gmra.mxu1 %v782_v63 }
 0x166   : > { %1260 = vmatprep.mubr.f32.mxu0 %v785_v2  ;;  %1662 = vmatprep.mubr.f32.mxu1 %v785_v2 }
 0x169   : > { %1261 = vmatmul.mubr.f32.gmra.mxu0 %v784_v3  ;;  %1663 = vmatmul.mubr.f32.gmra.mxu1 %v784_v3 }
 0x16a   : > { %1266 = vmatprep.mubr.f32.mxu0 %v787_v5  ;;  %1667 = vmatprep.mubr.f32.mxu1 %v787_v5 }
 0x16d   : > { %v980_v14 = vpop.f32.mrf.mxu0  ;;  %1267 = vmatmul.mubr.f32.gmra.mxu0 %v786_v10  ;;  %v1429_v16 = vpop.f32.mrf.mxu1  ;;  %1668 = vmatmul.mubr.f32.gmra.mxu1 %v786_v10 }
 0x16e   : > { %v2344_v15 = vadd.f32 %v3777_v9, %v980_v14  ;;  %1272 = vmatprep.mubr.f32.mxu0 %v789_v12  ;;  %v2346_v18 = vadd.f32 %v3780_v11, %v1429_v16  ;;  %1672 = vmatprep.mubr.f32.mxu1 %v789_v12  ;;  %v803_v12 = vld [vmem:[%s3531_s20 + $0x388] sm:$0xff] }
 0x16f   : > { %v982_v19 = vpop.f32.mrf.mxu0  ;;  %v1431_v22 = vpop.f32.mrf.mxu1 }
 0x170   : > { %2536 = vst [vmem:[%s3789_s15] sm:$0xff] %v2344_v15  ;;  %v2345_v21 = vadd.f32 %v3783_v13, %v982_v19  ;;  %2538 = vst [vmem:[%s3789_s15 + $0x10] sm:$0xff] %v2346_v18  ;;  %v802_v19 = vld [vmem:[%s3531_s20 + $0x380] sm:$0xff]  ;;  %v805_v22 = vld [vmem:[%s3531_s20 + $0x398] sm:$0xff] }
 0x171   : > { %v986_v23 = vpop.f32.mrf.mxu0  ;;  %1273 = vmatmul.mubr.f32.gmra.mxu0 %v788_v17  ;;  %v1434_v25 = vpop.f32.mrf.mxu1  ;;  %1673 = vmatmul.mubr.f32.gmra.mxu1 %v788_v17 }
 0x172   : > { %2537 = vst [vmem:[%s3789_s15 + $0x8] sm:$0xff] %v2345_v21  ;;  %v2347_v24 = vadd.f32 %v3777_v9, %v986_v23  ;;  %1278 = vmatprep.mubr.f32.mxu0 %v791_v20  ;;  %v2349_v27 = vadd.f32 %v3780_v11, %v1434_v25  ;;  %1677 = vmatprep.mubr.f32.mxu1 %v791_v20 }
 0x173   : > { %v988_v28 = vpop.f32.mrf.mxu0  ;;  %v1436_v31 = vpop.f32.mrf.mxu1 }
 0x174   : > { %2539 = vst [vmem:[%s3789_s15 + $0x18] sm:$0xff] %v2347_v24  ;;  %v2348_v30 = vadd.f32 %v3783_v13, %v988_v28  ;;  %2541 = vst [vmem:[%s3789_s15 + $0x28] sm:$0xff] %v2349_v27  ;;  %v804_v28 = vld [vmem:[%s3531_s20 + $0x390] sm:$0xff]  ;;  %v807_v31 = vld [vmem:[%s3531_s20 + $0x3a8] sm:$0xff] }
 0x175   : > { %v992_v32 = vpop.f32.mrf.mxu0  ;;  %1279 = vmatmul.mubr.f32.gmra.mxu0 %v790_v26  ;;  %v1439_v34 = vpop.f32.mrf.mxu1  ;;  %1678 = vmatmul.mubr.f32.gmra.mxu1 %v790_v26 }
 0x176   : > { %2540 = vst [vmem:[%s3789_s15 + $0x20] sm:$0xff] %v2348_v30  ;;  %v2350_v33 = vadd.f32 %v3777_v9, %v992_v32  ;;  %1284 = vmatprep.mubr.f32.mxu0 %v793_v29  ;;  %v2352_v36 = vadd.f32 %v3780_v11, %v1439_v34  ;;  %1682 = vmatprep.mubr.f32.mxu1 %v793_v29 }
 0x177   : > { %v994_v37 = vpop.f32.mrf.mxu0  ;;  %v1441_v39 = vpop.f32.mrf.mxu1 }
 0x178   : > { %2542 = vst [vmem:[%s3789_s15 + $0x30] sm:$0xff] %v2350_v33  ;;  %v2351_v0 = vadd.f32 %v3783_v13, %v994_v37  ;;  %2544 = vst [vmem:[%s3789_s15 + $0x40] sm:$0xff] %v2352_v36  ;;  %v806_v37 = vld [vmem:[%s3531_s20 + $0x3a0] sm:$0xff]  ;;  %v809_v39 = vld [vmem:[%s3531_s20 + $0x3b8] sm:$0xff] }
 0x179   : > { %v998_v40 = vpop.f32.mrf.mxu0  ;;  %1285 = vmatmul.mubr.f32.gmra.mxu0 %v792_v35  ;;  %v1444_v42 = vpop.f32.mrf.mxu1  ;;  %1683 = vmatmul.mubr.f32.gmra.mxu1 %v792_v35 }
 0x17a   : > { %2543 = vst [vmem:[%s3789_s15 + $0x38] sm:$0xff] %v2351_v0  ;;  %v2353_v41 = vadd.f32 %v3777_v9, %v998_v40  ;;  %1290 = vmatprep.mubr.f32.mxu0 %v795_v38  ;;  %v2355_v44 = vadd.f32 %v3780_v11, %v1444_v42  ;;  %1687 = vmatprep.mubr.f32.mxu1 %v795_v38 }
 0x17b   : > { %v1000_v45 = vpop.f32.mrf.mxu0  ;;  %v1446_v48 = vpop.f32.mrf.mxu1 }
 0x17c   : > { %2545 = vst [vmem:[%s3789_s15 + $0x48] sm:$0xff] %v2353_v41  ;;  %v2354_v47 = vadd.f32 %v3783_v13, %v1000_v45  ;;  %2547 = vst [vmem:[%s3789_s15 + $0x58] sm:$0xff] %v2355_v44  ;;  %v808_v45 = vld [vmem:[%s3531_s20 + $0x3b0] sm:$0xff]  ;;  %v811_v48 = vld [vmem:[%s3531_s20 + $0x3c8] sm:$0xff] }
 0x17d   : > { %v1004_v49 = vpop.f32.mrf.mxu0  ;;  %1291 = vmatmul.mubr.f32.gmra.mxu0 %v794_v43  ;;  %v1449_v51 = vpop.f32.mrf.mxu1  ;;  %1688 = vmatmul.mubr.f32.gmra.mxu1 %v794_v43 }
 0x17e   : > { %2546 = vst [vmem:[%s3789_s15 + $0x50] sm:$0xff] %v2354_v47  ;;  %v2356_v50 = vadd.f32 %v3777_v9, %v1004_v49  ;;  %1296 = vmatprep.mubr.f32.mxu0 %v797_v46  ;;  %v2358_v53 = vadd.f32 %v3780_v11, %v1449_v51  ;;  %1692 = vmatprep.mubr.f32.mxu1 %v797_v46 }
 0x17f   : > { %v1006_v54 = vpop.f32.mrf.mxu0  ;;  %v1451_v57 = vpop.f32.mrf.mxu1 }
 0x180   : > { %2548 = vst [vmem:[%s3789_s15 + $0x60] sm:$0xff] %v2356_v50  ;;  %v2357_v56 = vadd.f32 %v3783_v13, %v1006_v54  ;;  %2550 = vst [vmem:[%s3789_s15 + $0x70] sm:$0xff] %v2358_v53  ;;  %v810_v54 = vld [vmem:[%s3531_s20 + $0x3c0] sm:$0xff]  ;;  %v813_v57 = vld [vmem:[%s3531_s20 + $0x3d8] sm:$0xff] }
 0x181   : > { %v1010_v58 = vpop.f32.mrf.mxu0  ;;  %1297 = vmatmul.mubr.f32.gmra.mxu0 %v796_v52  ;;  %v1454_v60 = vpop.f32.mrf.mxu1  ;;  %1693 = vmatmul.mubr.f32.gmra.mxu1 %v796_v52 }
 0x182   : > { %2549 = vst [vmem:[%s3789_s15 + $0x68] sm:$0xff] %v2357_v56  ;;  %v2359_v59 = vadd.f32 %v3777_v9, %v1010_v58  ;;  %1302 = vmatprep.mubr.f32.mxu0 %v799_v55  ;;  %v2361_v62 = vadd.f32 %v3780_v11, %v1454_v60  ;;  %1697 = vmatprep.mubr.f32.mxu1 %v799_v55 }
 0x183   : > { %v1012_v63 = vpop.f32.mrf.mxu0  ;;  %v1456_v3 = vpop.f32.mrf.mxu1 }
 0x184   : > { %2551 = vst [vmem:[%s3789_s15 + $0x78] sm:$0xff] %v2359_v59  ;;  %v2360_v2 = vadd.f32 %v3783_v13, %v1012_v63  ;;  %2553 = vst [vmem:[%s3789_s15 + $0x88] sm:$0xff] %v2361_v62  ;;  %v812_v63 = vld [vmem:[%s3531_s20 + $0x3d0] sm:$0xff]  ;;  %v815_v3 = vld [vmem:[%s3531_s20 + $0x3e8] sm:$0xff] }
 0x185   : > { %v1016_v4 = vpop.f32.mrf.mxu0  ;;  %1303 = vmatmul.mubr.f32.gmra.mxu0 %v798_v61  ;;  %v1459_v6 = vpop.f32.mrf.mxu1  ;;  %1698 = vmatmul.mubr.f32.gmra.mxu1 %v798_v61 }
 0x186   : > { %2552 = vst [vmem:[%s3789_s15 + $0x80] sm:$0xff] %v2360_v2  ;;  %v2362_v5 = vadd.f32 %v3777_v9, %v1016_v4  ;;  %1308 = vmatprep.mubr.f32.mxu0 %v801_v1  ;;  %v2364_v8 = vadd.f32 %v3780_v11, %v1459_v6  ;;  %1702 = vmatprep.mubr.f32.mxu1 %v801_v1 }
 0x187   : > { %v1018_v10 = vpop.f32.mrf.mxu0  ;;  %v1461_v15 = vpop.f32.mrf.mxu1 }
 0x188   : > { %2554 = vst [vmem:[%s3789_s15 + $0x90] sm:$0xff] %v2362_v5  ;;  %v2363_v14 = vadd.f32 %v3783_v13, %v1018_v10  ;;  %2556 = vst [vmem:[%s3789_s15 + $0xa0] sm:$0xff] %v2364_v8  ;;  %v814_v10 = vld [vmem:[%s3531_s20 + $0x3e0] sm:$0xff]  ;;  %v817_v15 = vld [vmem:[%s3531_s20 + $0x3f8] sm:$0xff] }
 0x189   : > { %v1022_v16 = vpop.f32.mrf.mxu0  ;;  %1309 = vmatmul.mubr.f32.gmra.mxu0 %v800_v7  ;;  %v1464_v18 = vpop.f32.mrf.mxu1  ;;  %1703 = vmatmul.mubr.f32.gmra.mxu1 %v800_v7 }
 0x18a   : > { %2555 = vst [vmem:[%s3789_s15 + $0x98] sm:$0xff] %v2363_v14  ;;  %v2365_v17 = vadd.f32 %v3777_v9, %v1022_v16  ;;  %1314 = vmatprep.mubr.f32.mxu0 %v803_v12  ;;  %v2367_v20 = vadd.f32 %v3780_v11, %v1464_v18  ;;  %1707 = vmatprep.mubr.f32.mxu1 %v803_v12 }
 0x18b   : > { %v1024_v21 = vpop.f32.mrf.mxu0  ;;  %v1466_v24 = vpop.f32.mrf.mxu1 }
 0x18c   : > { %2557 = vst [vmem:[%s3789_s15 + $0xa8] sm:$0xff] %v2365_v17  ;;  %v2366_v23 = vadd.f32 %v3783_v13, %v1024_v21  ;;  %2559 = vst [vmem:[%s3789_s15 + $0xb8] sm:$0xff] %v2367_v20  ;;  %v816_v21 = vld [vmem:[%s3531_s20 + $0x3f0] sm:$0xff]  ;;  %s3140_s20 = scalar_lea.vmem %s4204_s18, 24576 }
 0x18d   : > { %v1028_v25 = vpop.f32.mrf.mxu0  ;;  %1315 = vmatmul.mubr.f32.gmra.mxu0 %v802_v19  ;;  %v1469_v27 = vpop.f32.mrf.mxu1  ;;  %1708 = vmatmul.mubr.f32.gmra.mxu1 %v802_v19  ;;  %p3141_p5 = scmp.ne.s32.totalorder %s4204_s18, %s3140_s20  ;;  %p3148_p13 = scmp.lt.s32.totalorder %s3146_s24, %s3140_s20 }
 0x18e   : > { %2558 = vst [vmem:[%s3789_s15 + $0xb0] sm:$0xff] %v2366_v23  ;;  %v2368_v26 = vadd.f32 %v3777_v9, %v1028_v25  ;;  %1320 = vmatprep.mubr.f32.mxu0 %v805_v22  ;;  %v2370_v29 = vadd.f32 %v3780_v11, %v1469_v27  ;;  %1712 = vmatprep.mubr.f32.mxu1 %v805_v22 }
 0x18f   : > { %v1030_v30 = vpop.f32.mrf.mxu0  ;;  %v1471_v33 = vpop.f32.mrf.mxu1  ;;  %p3142_p7 = pnand %p3141_p5, %p3489_p2  ;;  %p3149_p6 = por %p3148_p13, %p3147_p8 }
 0x190   : > { %2560 = vst [vmem:[%s3789_s15 + $0xc0] sm:$0xff] %v2368_v26  ;;  %v2369_v32 = vadd.f32 %v3783_v13, %v1030_v30  ;;  %2562 = vst [vmem:[%s3789_s15 + $0xd0] sm:$0xff] %v2370_v29 }
 0x191   : > { %v1034_v34 = vpop.f32.mrf.mxu0  ;;  %1321 = vmatmul.mubr.f32.gmra.mxu0 %v804_v28  ;;  %v1474_v36 = vpop.f32.mrf.mxu1  ;;  %1713 = vmatmul.mubr.f32.gmra.mxu1 %v804_v28  ;;  %p3143_p1 = pneg %p3142_p7 }
 0x192   : > { %2561 = vst [vmem:[%s3789_s15 + $0xc8] sm:$0xff] %v2369_v32  ;;  %v2371_v35 = vadd.f32 %v3777_v9, %v1034_v34  ;;  %1326 = vmatprep.mubr.f32.mxu0 %v807_v31  ;;  %v2373_v38 = vadd.f32 %v3780_v11, %v1474_v36  ;;  %1717 = vmatprep.mubr.f32.mxu1 %v807_v31 }
 0x193   : > { %v1036_v0 = vpop.f32.mrf.mxu0  ;;  %v1476_v41 = vpop.f32.mrf.mxu1  ;;  %p3150_p9 = pnand %p3149_p6, %p3143_p1 }
 0x194   : > { %2563 = vst [vmem:[%s3789_s15 + $0xd8] sm:$0xff] %v2371_v35  ;;  %v2372_v40 = vadd.f32 %v3783_v13, %v1036_v0  ;;  %2565 = vst [vmem:[%s3789_s15 + $0xe8] sm:$0xff] %v2373_v38 }
 0x195   : > { %v1040_v42 = vpop.f32.mrf.mxu0  ;;  %1327 = vmatmul.mubr.f32.gmra.mxu0 %v806_v37  ;;  %v1479_v44 = vpop.f32.mrf.mxu1  ;;  %1718 = vmatmul.mubr.f32.gmra.mxu1 %v806_v37 }
 0x196   : > { %2564 = vst [vmem:[%s3789_s15 + $0xe0] sm:$0xff] %v2372_v40  ;;  %v2374_v43 = vadd.f32 %v3777_v9, %v1040_v42  ;;  %1332 = vmatprep.mubr.f32.mxu0 %v809_v39  ;;  %v2376_v46 = vadd.f32 %v3780_v11, %v1479_v44  ;;  %1722 = vmatprep.mubr.f32.mxu1 %v809_v39 }
 0x197   : > { %v1042_v47 = vpop.f32.mrf.mxu0  ;;  %v1481_v50 = vpop.f32.mrf.mxu1 }
 0x198   : > { %2566 = vst [vmem:[%s3789_s15 + $0xf0] sm:$0xff] %v2374_v43  ;;  %v2375_v49 = vadd.f32 %v3783_v13, %v1042_v47  ;;  %2568 = vst [vmem:[%s3789_s15 + $0x100] sm:$0xff] %v2376_v46 }
 0x199   : > { %v1046_v51 = vpop.f32.mrf.mxu0  ;;  %1333 = vmatmul.mubr.f32.gmra.mxu0 %v808_v45  ;;  %v1484_v53 = vpop.f32.mrf.mxu1  ;;  %1723 = vmatmul.mubr.f32.gmra.mxu1 %v808_v45 }
 0x19a   : > { %2567 = vst [vmem:[%s3789_s15 + $0xf8] sm:$0xff] %v2375_v49  ;;  %v2377_v52 = vadd.f32 %v3777_v9, %v1046_v51  ;;  %1338 = vmatprep.mubr.f32.mxu0 %v811_v48  ;;  %v2379_v55 = vadd.f32 %v3780_v11, %v1484_v53  ;;  %1727 = vmatprep.mubr.f32.mxu1 %v811_v48 }
 0x19b   : > { %v1048_v56 = vpop.f32.mrf.mxu0  ;;  %v1486_v59 = vpop.f32.mrf.mxu1 }
 0x19c   : > { %2569 = vst [vmem:[%s3789_s15 + $0x108] sm:$0xff] %v2377_v52  ;;  %v2378_v58 = vadd.f32 %v3783_v13, %v1048_v56  ;;  %2571 = vst [vmem:[%s3789_s15 + $0x118] sm:$0xff] %v2379_v55 }
 0x19d   : > { %v1052_v60 = vpop.f32.mrf.mxu0  ;;  %1339 = vmatmul.mubr.f32.gmra.mxu0 %v810_v54  ;;  %v1489_v62 = vpop.f32.mrf.mxu1  ;;  %1728 = vmatmul.mubr.f32.gmra.mxu1 %v810_v54 }
 0x19e   : > { %2570 = vst [vmem:[%s3789_s15 + $0x110] sm:$0xff] %v2378_v58  ;;  %v2380_v61 = vadd.f32 %v3777_v9, %v1052_v60  ;;  %1344 = vmatprep.mubr.f32.mxu0 %v813_v57  ;;  %v2382_v1 = vadd.f32 %v3780_v11, %v1489_v62  ;;  %1732 = vmatprep.mubr.f32.mxu1 %v813_v57 }
 0x19f   : > { %v1054_v2 = vpop.f32.mrf.mxu0  ;;  %v1491_v5 = vpop.f32.mrf.mxu1 }
 0x1a0   : > { %2572 = vst [vmem:[%s3789_s15 + $0x120] sm:$0xff] %v2380_v61  ;;  %v2381_v4 = vadd.f32 %v3783_v13, %v1054_v2  ;;  %2574 = vst [vmem:[%s3789_s15 + $0x130] sm:$0xff] %v2382_v1 }
 0x1a1   : > { %v1058_v6 = vpop.f32.mrf.mxu0  ;;  %1345 = vmatmul.mubr.f32.gmra.mxu0 %v812_v63  ;;  %v1494_v8 = vpop.f32.mrf.mxu1  ;;  %1733 = vmatmul.mubr.f32.gmra.mxu1 %v812_v63 }
 0x1a2   : > { %2573 = vst [vmem:[%s3789_s15 + $0x128] sm:$0xff] %v2381_v4  ;;  %v2383_v7 = vadd.f32 %v3777_v9, %v1058_v6  ;;  %1350 = vmatprep.mubr.f32.mxu0 %v815_v3  ;;  %v2385_v12 = vadd.f32 %v3780_v11, %v1494_v8  ;;  %1737 = vmatprep.mubr.f32.mxu1 %v815_v3 }
 0x1a3   : > { %v1060_v14 = vpop.f32.mrf.mxu0  ;;  %v1496_v17 = vpop.f32.mrf.mxu1 }
 0x1a4   : > { %2575 = vst [vmem:[%s3789_s15 + $0x138] sm:$0xff] %v2383_v7  ;;  %v2384_v16 = vadd.f32 %v3783_v13, %v1060_v14  ;;  %2577 = vst [vmem:[%s3789_s15 + $0x148] sm:$0xff] %v2385_v12 }
 0x1a5   : > { %v1064_v18 = vpop.f32.mrf.mxu0  ;;  %1351 = vmatmul.mubr.f32.gmra.mxu0 %v814_v10  ;;  %v1499_v20 = vpop.f32.mrf.mxu1  ;;  %1738 = vmatmul.mubr.f32.gmra.mxu1 %v814_v10 }
 0x1a6   : > { %2576 = vst [vmem:[%s3789_s15 + $0x140] sm:$0xff] %v2384_v16  ;;  %v2386_v19 = vadd.f32 %v3777_v9, %v1064_v18  ;;  %1356 = vmatprep.mubr.f32.mxu0 %v817_v15  ;;  %v2388_v22 = vadd.f32 %v3780_v11, %v1499_v20  ;;  %1742 = vmatprep.mubr.f32.mxu1 %v817_v15 }
 0x1a7   : > { %v1066_v23 = vpop.f32.mrf.mxu0  ;;  %v1501_v25 = vpop.f32.mrf.mxu1 }
 0x1a8   : > { %2578 = vst [vmem:[%s3789_s15 + $0x150] sm:$0xff] %v2386_v19  ;;  %v2387_v24 = vadd.f32 %v3783_v13, %v1066_v23  ;;  %2580 = vst [vmem:[%s3789_s15 + $0x160] sm:$0xff] %v2388_v22 }
 0x1a9   : > { %v1070_v26 = vpop.f32.mrf.mxu0  ;;  %1357 = vmatmul.mubr.f32.gmra.mxu0 %v816_v21  ;;  %v1504_v28 = vpop.f32.mrf.mxu1  ;;  %1743 = vmatmul.mubr.f32.gmra.mxu1 %v816_v21 }
 0x1aa   : > { %2579 = vst [vmem:[%s3789_s15 + $0x158] sm:$0xff] %v2387_v24  ;;  %v2389_v27 = vadd.f32 %v3777_v9, %v1070_v26  ;;  %v2391_v29 = vadd.f32 %v3780_v11, %v1504_v28 }
 0x1ab   : > { %v1072_v30 = vpop.f32.mrf.mxu0  ;;  %v1506_v32 = vpop.f32.mrf.mxu1 }
 0x1ac   : > { %2581 = vst [vmem:[%s3789_s15 + $0x168] sm:$0xff] %v2389_v27  ;;  %v2390_v31 = vadd.f32 %v3783_v13, %v1072_v30  ;;  %2583 = vst [vmem:[%s3789_s15 + $0x178] sm:$0xff] %v2391_v29 }
 0x1ad   : > { %v1076_v33 = vpop.f32.mrf.mxu0  ;;  %v1509_v35 = vpop.f32.mrf.mxu1 }
 0x1ae   : > { %2582 = vst [vmem:[%s3789_s15 + $0x170] sm:$0xff] %v2390_v31  ;;  %v2392_v34 = vadd.f32 %v3777_v9, %v1076_v33  ;;  %v2394_v36 = vadd.f32 %v3780_v11, %v1509_v35 }
 0x1af   : > { %v1078_v37 = vpop.f32.mrf.mxu0  ;;  %v1511_v0 = vpop.f32.mrf.mxu1 }
 0x1b0   : > { %2584 = vst [vmem:[%s3789_s15 + $0x180] sm:$0xff] %v2392_v34  ;;  %v2393_v38 = vadd.f32 %v3783_v13, %v1078_v37  ;;  %2586 = vst [vmem:[%s3789_s15 + $0x190] sm:$0xff] %v2394_v36 }
 0x1b1   : > { %v1082_v39 = vpop.f32.mrf.mxu0  ;;  %v1514_v41 = vpop.f32.mrf.mxu1 }
 0x1b2   : > { %2585 = vst [vmem:[%s3789_s15 + $0x188] sm:$0xff] %v2393_v38  ;;  %v2395_v40 = vadd.f32 %v3777_v9, %v1082_v39  ;;  %v2397_v42 = vadd.f32 %v3780_v11, %v1514_v41 }
 0x1b3   : > { %v1084_v43 = vpop.f32.mrf.mxu0  ;;  %v1516_v45 = vpop.f32.mrf.mxu1 }
 0x1b4   : > { %2587 = vst [vmem:[%s3789_s15 + $0x198] sm:$0xff] %v2395_v40  ;;  %v2396_v44 = vadd.f32 %v3783_v13, %v1084_v43  ;;  %2589 = vst [vmem:[%s3789_s15 + $0x1a8] sm:$0xff] %v2397_v42 }
 0x1b5   : > { %v1088_v46 = vpop.f32.mrf.mxu0  ;;  %v1519_v48 = vpop.f32.mrf.mxu1 }
 0x1b6   : > { %2588 = vst [vmem:[%s3789_s15 + $0x1a0] sm:$0xff] %v2396_v44  ;;  %v2398_v47 = vadd.f32 %v3777_v9, %v1088_v46  ;;  %v2400_v49 = vadd.f32 %v3780_v11, %v1519_v48 }
 0x1b7   : > { %v1090_v50 = vpop.f32.mrf.mxu0  ;;  %v1521_v52 = vpop.f32.mrf.mxu1 }
 0x1b8   : > { %2590 = vst [vmem:[%s3789_s15 + $0x1b0] sm:$0xff] %v2398_v47  ;;  %v2399_v51 = vadd.f32 %v3783_v13, %v1090_v50  ;;  %2592 = vst [vmem:[%s3789_s15 + $0x1c0] sm:$0xff] %v2400_v49 }
 0x1b9   : > { %v1094_v53 = vpop.f32.mrf.mxu0  ;;  %v1524_v55 = vpop.f32.mrf.mxu1 }
 0x1ba   : > { %2591 = vst [vmem:[%s3789_s15 + $0x1b8] sm:$0xff] %v2399_v51  ;;  %v2401_v54 = vadd.f32 %v3777_v9, %v1094_v53  ;;  %v2403_v56 = vadd.f32 %v3780_v11, %v1524_v55 }
 0x1bb   : > { %v1096_v57 = vpop.f32.mrf.mxu0  ;;  %v1526_v59 = vpop.f32.mrf.mxu1 }
 0x1bc   : > { %2593 = vst [vmem:[%s3789_s15 + $0x1c8] sm:$0xff] %v2401_v54  ;;  %v2402_v58 = vadd.f32 %v3783_v13, %v1096_v57  ;;  %2595 = vst [vmem:[%s3789_s15 + $0x1d8] sm:$0xff] %v2403_v56 }
 0x1bd   : > { %v1100_v60 = vpop.f32.mrf.mxu0  ;;  %v1529_v62 = vpop.f32.mrf.mxu1 }
 0x1be   : > { %2594 = vst [vmem:[%s3789_s15 + $0x1d0] sm:$0xff] %v2402_v58  ;;  %v2404_v61 = vadd.f32 %v3777_v9, %v1100_v60  ;;  %v2406_v63 = vadd.f32 %v3780_v11, %v1529_v62 }
 0x1bf   : > { %v1102_v1 = vpop.f32.mrf.mxu0  ;;  %v1531_v3 = vpop.f32.mrf.mxu1 }
 0x1c0   : > { %2596 = vst [vmem:[%s3789_s15 + $0x1e0] sm:$0xff] %v2404_v61  ;;  %v2405_v2 = vadd.f32 %v3783_v13, %v1102_v1  ;;  %2598 = vst [vmem:[%s3789_s15 + $0x1f0] sm:$0xff] %v2406_v63 }
 0x1c1   : > { %v1106_v4 = vpop.f32.mrf.mxu0  ;;  %v1534_v6 = vpop.f32.mrf.mxu1 }
 0x1c2   : > { %2597 = vst [vmem:[%s3789_s15 + $0x1e8] sm:$0xff] %v2405_v2  ;;  %v2407_v5 = vadd.f32 %v3777_v9, %v1106_v4  ;;  %v2409_v7 = vadd.f32 %v3780_v11, %v1534_v6 }
 0x1c3   : > { %v1108_v8 = vpop.f32.mrf.mxu0  ;;  %v1536_v12 = vpop.f32.mrf.mxu1 }
 0x1c4   : > { %2599 = vst [vmem:[%s3789_s15 + $0x1f8] sm:$0xff] %v2407_v5  ;;  %v2408_v10 = vadd.f32 %v3783_v13, %v1108_v8  ;;  %2601 = vst [vmem:[%s3789_s15 + $0x208] sm:$0xff] %v2409_v7 }
 0x1c5   : > { %v1112_v14 = vpop.f32.mrf.mxu0  ;;  %v1539_v16 = vpop.f32.mrf.mxu1 }
 0x1c6   : > { %2600 = vst [vmem:[%s3789_s15 + $0x200] sm:$0xff] %v2408_v10  ;;  %v2410_v15 = vadd.f32 %v3777_v9, %v1112_v14  ;;  %v2412_v17 = vadd.f32 %v3780_v11, %v1539_v16 }
 0x1c7   : > { %v1114_v18 = vpop.f32.mrf.mxu0  ;;  %v1541_v20 = vpop.f32.mrf.mxu1 }
 0x1c8   : > { %2602 = vst [vmem:[%s3789_s15 + $0x210] sm:$0xff] %v2410_v15  ;;  %v2411_v19 = vadd.f32 %v3783_v13, %v1114_v18  ;;  %2604 = vst [vmem:[%s3789_s15 + $0x220] sm:$0xff] %v2412_v17 }
 0x1c9   : > { %v1118_v21 = vpop.f32.mrf.mxu0  ;;  %v1544_v23 = vpop.f32.mrf.mxu1 }
 0x1ca   : > { %2603 = vst [vmem:[%s3789_s15 + $0x218] sm:$0xff] %v2411_v19  ;;  %v2413_v22 = vadd.f32 %v3777_v9, %v1118_v21  ;;  %v2415_v24 = vadd.f32 %v3780_v11, %v1544_v23 }
 0x1cb   : > { %v1120_v25 = vpop.f32.mrf.mxu0  ;;  %v1546_v27 = vpop.f32.mrf.mxu1 }
 0x1cc   : > { %2605 = vst [vmem:[%s3789_s15 + $0x228] sm:$0xff] %v2413_v22  ;;  %v2414_v26 = vadd.f32 %v3783_v13, %v1120_v25  ;;  %2607 = vst [vmem:[%s3789_s15 + $0x238] sm:$0xff] %v2415_v24 }
 0x1cd   : > { %v1124_v28 = vpop.f32.mrf.mxu0  ;;  %v1549_v30 = vpop.f32.mrf.mxu1 }
 0x1ce   : > { %2606 = vst [vmem:[%s3789_s15 + $0x230] sm:$0xff] %v2414_v26  ;;  %v2416_v29 = vadd.f32 %v3777_v9, %v1124_v28  ;;  %v2418_v31 = vadd.f32 %v3780_v11, %v1549_v30 }
 0x1cf   : > { %v1126_v32 = vpop.f32.mrf.mxu0  ;;  %v1551_v34 = vpop.f32.mrf.mxu1 }
 0x1d0   : > { %2608 = vst [vmem:[%s3789_s15 + $0x240] sm:$0xff] %v2416_v29  ;;  %v2417_v33 = vadd.f32 %v3783_v13, %v1126_v32  ;;  %2610 = vst [vmem:[%s3789_s15 + $0x250] sm:$0xff] %v2418_v31 }
 0x1d1   : > { %v1130_v35 = vpop.f32.mrf.mxu0  ;;  %v1554_v37 = vpop.f32.mrf.mxu1 }
 0x1d2   : > { %2609 = vst [vmem:[%s3789_s15 + $0x248] sm:$0xff] %v2417_v33  ;;  %v2419_v36 = vadd.f32 %v3777_v9, %v1130_v35  ;;  %v2421_v38 = vadd.f32 %v3780_v11, %v1554_v37 }
 0x1d3   : > { %v1132_v0 = vpop.f32.mrf.mxu0  ;;  %v1556_v40 = vpop.f32.mrf.mxu1 }
 0x1d4   : > { %2611 = vst [vmem:[%s3789_s15 + $0x258] sm:$0xff] %v2419_v36  ;;  %v2420_v39 = vadd.f32 %v3783_v13, %v1132_v0  ;;  %2613 = vst [vmem:[%s3789_s15 + $0x268] sm:$0xff] %v2421_v38 }
 0x1d5   : > { %v1136_v41 = vpop.f32.mrf.mxu0  ;;  %v1559_v43 = vpop.f32.mrf.mxu1 }
 0x1d6   : > { %2612 = vst [vmem:[%s3789_s15 + $0x260] sm:$0xff] %v2420_v39  ;;  %v2422_v42 = vadd.f32 %v3777_v9, %v1136_v41  ;;  %v2424_v44 = vadd.f32 %v3780_v11, %v1559_v43 }
 0x1d7   : > { %v1138_v45 = vpop.f32.mrf.mxu0  ;;  %v1561_v47 = vpop.f32.mrf.mxu1 }
 0x1d8   : > { %2614 = vst [vmem:[%s3789_s15 + $0x270] sm:$0xff] %v2422_v42  ;;  %v2423_v46 = vadd.f32 %v3783_v13, %v1138_v45  ;;  %2616 = vst [vmem:[%s3789_s15 + $0x280] sm:$0xff] %v2424_v44 }
 0x1d9   : > { %v1142_v48 = vpop.f32.mrf.mxu0  ;;  %v1564_v50 = vpop.f32.mrf.mxu1 }
 0x1da   : > { %2615 = vst [vmem:[%s3789_s15 + $0x278] sm:$0xff] %v2423_v46  ;;  %v2425_v49 = vadd.f32 %v3777_v9, %v1142_v48  ;;  %v2427_v51 = vadd.f32 %v3780_v11, %v1564_v50 }
 0x1db   : > { %v1144_v52 = vpop.f32.mrf.mxu0  ;;  %v1566_v54 = vpop.f32.mrf.mxu1 }
 0x1dc   : > { %2617 = vst [vmem:[%s3789_s15 + $0x288] sm:$0xff] %v2425_v49  ;;  %v2426_v53 = vadd.f32 %v3783_v13, %v1144_v52  ;;  %2619 = vst [vmem:[%s3789_s15 + $0x298] sm:$0xff] %v2427_v51 }
 0x1dd   : > { %v1148_v55 = vpop.f32.mrf.mxu0  ;;  %v1569_v57 = vpop.f32.mrf.mxu1 }
 0x1de   : > { %2618 = vst [vmem:[%s3789_s15 + $0x290] sm:$0xff] %v2426_v53  ;;  %v2428_v56 = vadd.f32 %v3777_v9, %v1148_v55  ;;  %v2430_v58 = vadd.f32 %v3780_v11, %v1569_v57 }
 0x1df   : > { %v1150_v59 = vpop.f32.mrf.mxu0  ;;  %v1571_v61 = vpop.f32.mrf.mxu1 }
 0x1e0   : > { %2620 = vst [vmem:[%s3789_s15 + $0x2a0] sm:$0xff] %v2428_v56  ;;  %v2429_v60 = vadd.f32 %v3783_v13, %v1150_v59  ;;  %2622 = vst [vmem:[%s3789_s15 + $0x2b0] sm:$0xff] %v2430_v58 }
 0x1e1   : > { %v1154_v62 = vpop.f32.mrf.mxu0  ;;  %v1574_v1 = vpop.f32.mrf.mxu1 }
 0x1e2   : > { %2621 = vst [vmem:[%s3789_s15 + $0x2a8] sm:$0xff] %v2429_v60  ;;  %v2431_v63 = vadd.f32 %v3777_v9, %v1154_v62  ;;  %v2433_v2 = vadd.f32 %v3780_v11, %v1574_v1 }
 0x1e3   : > { %v1156_v3 = vpop.f32.mrf.mxu0  ;;  %v1576_v5 = vpop.f32.mrf.mxu1 }
 0x1e4   : > { %2623 = vst [vmem:[%s3789_s15 + $0x2b8] sm:$0xff] %v2431_v63  ;;  %v2432_v4 = vadd.f32 %v3783_v13, %v1156_v3  ;;  %2625 = vst [vmem:[%s3789_s15 + $0x2c8] sm:$0xff] %v2433_v2 }
 0x1e5   : > { %v1160_v6 = vpop.f32.mrf.mxu0  ;;  %v1579_v8 = vpop.f32.mrf.mxu1 }
 0x1e6   : > { %2624 = vst [vmem:[%s3789_s15 + $0x2c0] sm:$0xff] %v2432_v4  ;;  %v2434_v7 = vadd.f32 %v3777_v9, %v1160_v6  ;;  %v2436_v10 = vadd.f32 %v3780_v11, %v1579_v8 }
 0x1e7   : > { %v1162_v12 = vpop.f32.mrf.mxu0  ;;  %v1581_v15 = vpop.f32.mrf.mxu1 }
 0x1e8   : > { %2626 = vst [vmem:[%s3789_s15 + $0x2d0] sm:$0xff] %v2434_v7  ;;  %v2435_v14 = vadd.f32 %v3783_v13, %v1162_v12  ;;  %2628 = vst [vmem:[%s3789_s15 + $0x2e0] sm:$0xff] %v2436_v10 }
 0x1e9   : > { %v1166_v16 = vpop.f32.mrf.mxu0  ;;  %v1584_v18 = vpop.f32.mrf.mxu1 }
 0x1ea   : > { %2627 = vst [vmem:[%s3789_s15 + $0x2d8] sm:$0xff] %v2435_v14  ;;  %v2437_v17 = vadd.f32 %v3777_v9, %v1166_v16  ;;  %v2439_v19 = vadd.f32 %v3780_v11, %v1584_v18 }
 0x1eb   : > { %v1168_v20 = vpop.f32.mrf.mxu0  ;;  %v1586_v22 = vpop.f32.mrf.mxu1 }
 0x1ec   : > { %2629 = vst [vmem:[%s3789_s15 + $0x2e8] sm:$0xff] %v2437_v17  ;;  %v2438_v21 = vadd.f32 %v3783_v13, %v1168_v20  ;;  %2631 = vst [vmem:[%s3789_s15 + $0x2f8] sm:$0xff] %v2439_v19 }
 0x1ed   : > { %v1172_v23 = vpop.f32.mrf.mxu0  ;;  %v1589_v25 = vpop.f32.mrf.mxu1 }
 0x1ee   : > { %2630 = vst [vmem:[%s3789_s15 + $0x2f0] sm:$0xff] %v2438_v21  ;;  %v2440_v24 = vadd.f32 %v3777_v9, %v1172_v23  ;;  %v2442_v26 = vadd.f32 %v3780_v11, %v1589_v25 }
 0x1ef   : > { %v1174_v27 = vpop.f32.mrf.mxu0  ;;  %v1591_v29 = vpop.f32.mrf.mxu1 }
 0x1f0   : > { %2632 = vst [vmem:[%s3789_s15 + $0x300] sm:$0xff] %v2440_v24  ;;  %v2441_v28 = vadd.f32 %v3783_v13, %v1174_v27  ;;  %2634 = vst [vmem:[%s3789_s15 + $0x310] sm:$0xff] %v2442_v26 }
 0x1f1   : > { %v1178_v30 = vpop.f32.mrf.mxu0  ;;  %v1594_v32 = vpop.f32.mrf.mxu1 }
 0x1f2   : > { %2633 = vst [vmem:[%s3789_s15 + $0x308] sm:$0xff] %v2441_v28  ;;  %v2443_v31 = vadd.f32 %v3777_v9, %v1178_v30  ;;  %v2445_v33 = vadd.f32 %v3780_v11, %v1594_v32 }
 0x1f3   : > { %v1180_v34 = vpop.f32.mrf.mxu0  ;;  %v1596_v36 = vpop.f32.mrf.mxu1 }
 0x1f4   : > { %2635 = vst [vmem:[%s3789_s15 + $0x318] sm:$0xff] %v2443_v31  ;;  %v2444_v35 = vadd.f32 %v3783_v13, %v1180_v34  ;;  %2637 = vst [vmem:[%s3789_s15 + $0x328] sm:$0xff] %v2445_v33 }
 0x1f5   : > { %v1184_v37 = vpop.f32.mrf.mxu0  ;;  %v1599_v0 = vpop.f32.mrf.mxu1 }
 0x1f6   : > { %2636 = vst [vmem:[%s3789_s15 + $0x320] sm:$0xff] %v2444_v35  ;;  %v2446_v38 = vadd.f32 %v3777_v9, %v1184_v37  ;;  %v2448_v39 = vadd.f32 %v3780_v11, %v1599_v0 }
 0x1f7   : > { %v1186_v40 = vpop.f32.mrf.mxu0  ;;  %v1601_v42 = vpop.f32.mrf.mxu1 }
 0x1f8   : > { %2638 = vst [vmem:[%s3789_s15 + $0x330] sm:$0xff] %v2446_v38  ;;  %v2447_v41 = vadd.f32 %v3783_v13, %v1186_v40  ;;  %2640 = vst [vmem:[%s3789_s15 + $0x340] sm:$0xff] %v2448_v39 }
 0x1f9   : > { %v1190_v43 = vpop.f32.mrf.mxu0  ;;  %v1604_v45 = vpop.f32.mrf.mxu1 }
 0x1fa   : > { %2639 = vst [vmem:[%s3789_s15 + $0x338] sm:$0xff] %v2447_v41  ;;  %v2449_v44 = vadd.f32 %v3777_v9, %v1190_v43  ;;  %v2451_v46 = vadd.f32 %v3780_v11, %v1604_v45 }
 0x1fb   : > { %v1192_v47 = vpop.f32.mrf.mxu0  ;;  %v1606_v49 = vpop.f32.mrf.mxu1 }
 0x1fc   : > { %2641 = vst [vmem:[%s3789_s15 + $0x348] sm:$0xff] %v2449_v44  ;;  %v2450_v48 = vadd.f32 %v3783_v13, %v1192_v47  ;;  %2643 = vst [vmem:[%s3789_s15 + $0x358] sm:$0xff] %v2451_v46 }
 0x1fd   : > { %v1196_v50 = vpop.f32.mrf.mxu0  ;;  %v1609_v52 = vpop.f32.mrf.mxu1 }
 0x1fe   : > { %2642 = vst [vmem:[%s3789_s15 + $0x350] sm:$0xff] %v2450_v48  ;;  %v2452_v51 = vadd.f32 %v3777_v9, %v1196_v50  ;;  %v2454_v53 = vadd.f32 %v3780_v11, %v1609_v52 }
 0x1ff   : > { %v1198_v54 = vpop.f32.mrf.mxu0  ;;  %v1611_v56 = vpop.f32.mrf.mxu1 }
 0x200   : > { %2644 = vst [vmem:[%s3789_s15 + $0x360] sm:$0xff] %v2452_v51  ;;  %v2453_v55 = vadd.f32 %v3783_v13, %v1198_v54  ;;  %2646 = vst [vmem:[%s3789_s15 + $0x370] sm:$0xff] %v2454_v53 }
 0x201   : > { %v1202_v57 = vpop.f32.mrf.mxu0  ;;  %v1614_v59 = vpop.f32.mrf.mxu1 }
 0x202   : > { %2645 = vst [vmem:[%s3789_s15 + $0x368] sm:$0xff] %v2453_v55  ;;  %v2455_v58 = vadd.f32 %v3777_v9, %v1202_v57  ;;  %v2457_v60 = vadd.f32 %v3780_v11, %v1614_v59 }
 0x203   : > { %v1204_v61 = vpop.f32.mrf.mxu0  ;;  %v1616_v63 = vpop.f32.mrf.mxu1 }
 0x204   : > { %2647 = vst [vmem:[%s3789_s15 + $0x378] sm:$0xff] %v2455_v58  ;;  %v2456_v62 = vadd.f32 %v3783_v13, %v1204_v61  ;;  %2649 = vst [vmem:[%s3789_s15 + $0x388] sm:$0xff] %v2457_v60 }
 0x205   : > { %v1208_v1 = vpop.f32.mrf.mxu0  ;;  %v1619_v3 = vpop.f32.mrf.mxu1 }
 0x206   : > { %2648 = vst [vmem:[%s3789_s15 + $0x380] sm:$0xff] %v2456_v62  ;;  %v2458_v2 = vadd.f32 %v3777_v9, %v1208_v1  ;;  %v2460_v4 = vadd.f32 %v3780_v11, %v1619_v3 }
 0x207   : > { %v1210_v5 = vpop.f32.mrf.mxu0  ;;  %v1621_v7 = vpop.f32.mrf.mxu1 }
 0x208   : > { %2650 = vst [vmem:[%s3789_s15 + $0x390] sm:$0xff] %v2458_v2  ;;  %v2459_v6 = vadd.f32 %v3783_v13, %v1210_v5  ;;  %2652 = vst [vmem:[%s3789_s15 + $0x3a0] sm:$0xff] %v2460_v4 }
 0x209   : > { %v1214_v8 = vpop.f32.mrf.mxu0  ;;  %v1624_v12 = vpop.f32.mrf.mxu1 }
 0x20a   : > { %2651 = vst [vmem:[%s3789_s15 + $0x398] sm:$0xff] %v2459_v6  ;;  %v2461_v10 = vadd.f32 %v3777_v9, %v1214_v8  ;;  %v2463_v14 = vadd.f32 %v3780_v11, %v1624_v12 }
 0x20b   : > { %v1216_v15 = vpop.f32.mrf.mxu0  ;;  %v1626_v17 = vpop.f32.mrf.mxu1 }
 0x20c   : > { %2653 = vst [vmem:[%s3789_s15 + $0x3a8] sm:$0xff] %v2461_v10  ;;  %v2462_v16 = vadd.f32 %v3783_v13, %v1216_v15  ;;  %2655 = vst [vmem:[%s3789_s15 + $0x3b8] sm:$0xff] %v2463_v14 }
 0x20d   : > { %v1220_v18 = vpop.f32.mrf.mxu0  ;;  %v1629_v20 = vpop.f32.mrf.mxu1 }
 0x20e   : > { %2654 = vst [vmem:[%s3789_s15 + $0x3b0] sm:$0xff] %v2462_v16  ;;  %v2464_v19 = vadd.f32 %v3777_v9, %v1220_v18  ;;  %v2466_v21 = vadd.f32 %v3780_v11, %v1629_v20 }
 0x20f   : > { %v1222_v22 = vpop.f32.mrf.mxu0  ;;  %v1631_v24 = vpop.f32.mrf.mxu1 }
 0x210   : > { %2656 = vst [vmem:[%s3789_s15 + $0x3c0] sm:$0xff] %v2464_v19  ;;  %v2465_v23 = vadd.f32 %v3783_v13, %v1222_v22  ;;  %2658 = vst [vmem:[%s3789_s15 + $0x3d0] sm:$0xff] %v2466_v21 }
 0x211   : > { %v1226_v25 = vpop.f32.mrf.mxu0  ;;  %v1634_v27 = vpop.f32.mrf.mxu1 }
 0x212   : > { %2657 = vst [vmem:[%s3789_s15 + $0x3c8] sm:$0xff] %v2465_v23  ;;  %v2467_v26 = vadd.f32 %v3777_v9, %v1226_v25  ;;  %v2469_v28 = vadd.f32 %v3780_v11, %v1634_v27 }
 0x213   : > { %v1228_v29 = vpop.f32.mrf.mxu0  ;;  %v1636_v31 = vpop.f32.mrf.mxu1 }
 0x214   : > { %2659 = vst [vmem:[%s3789_s15 + $0x3d8] sm:$0xff] %v2467_v26  ;;  %v2468_v30 = vadd.f32 %v3783_v13, %v1228_v29  ;;  %2661 = vst [vmem:[%s3789_s15 + $0x3e8] sm:$0xff] %v2469_v28 }
 0x215   : > { %v1232_v32 = vpop.f32.mrf.mxu0  ;;  %v1639_v34 = vpop.f32.mrf.mxu1 }
 0x216   : > { %2660 = vst [vmem:[%s3789_s15 + $0x3e0] sm:$0xff] %v2468_v30  ;;  %v2470_v33 = vadd.f32 %v3777_v9, %v1232_v32  ;;  %v2472_v35 = vadd.f32 %v3780_v11, %v1639_v34 }
 0x217   : > { %v1234_v36 = vpop.f32.mrf.mxu0  ;;  %v1641_v38 = vpop.f32.mrf.mxu1 }
 0x218   : > { %2662 = vst [vmem:[%s3789_s15 + $0x3f0] sm:$0xff] %v2470_v33  ;;  %v2471_v37 = vadd.f32 %v3783_v13, %v1234_v36  ;;  %2664 = vst [vmem:[%s3789_s15 + $0x400] sm:$0xff] %v2472_v35 }
 0x219   : > { %v1238_v0 = vpop.f32.mrf.mxu0  ;;  %v1644_v40 = vpop.f32.mrf.mxu1 }
 0x21a   : > { %2663 = vst [vmem:[%s3789_s15 + $0x3f8] sm:$0xff] %v2471_v37  ;;  %v2473_v39 = vadd.f32 %v3777_v9, %v1238_v0  ;;  %v2475_v41 = vadd.f32 %v3780_v11, %v1644_v40 }
 0x21b   : > { %v1240_v42 = vpop.f32.mrf.mxu0  ;;  %v1646_v44 = vpop.f32.mrf.mxu1 }
 0x21c   : > { %2665 = vst [vmem:[%s3789_s15 + $0x408] sm:$0xff] %v2473_v39  ;;  %v2474_v43 = vadd.f32 %v3783_v13, %v1240_v42  ;;  %2667 = vst [vmem:[%s3789_s15 + $0x418] sm:$0xff] %v2475_v41 }
 0x21d   : > { %v1244_v45 = vpop.f32.mrf.mxu0  ;;  %v1649_v47 = vpop.f32.mrf.mxu1 }
 0x21e   : > { %2666 = vst [vmem:[%s3789_s15 + $0x410] sm:$0xff] %v2474_v43  ;;  %v2476_v46 = vadd.f32 %v3777_v9, %v1244_v45  ;;  %v2478_v48 = vadd.f32 %v3780_v11, %v1649_v47 }
 0x21f   : > { %v1246_v49 = vpop.f32.mrf.mxu0  ;;  %v1651_v51 = vpop.f32.mrf.mxu1 }
 0x220   : > { %2668 = vst [vmem:[%s3789_s15 + $0x420] sm:$0xff] %v2476_v46  ;;  %v2477_v50 = vadd.f32 %v3783_v13, %v1246_v49  ;;  %2670 = vst [vmem:[%s3789_s15 + $0x430] sm:$0xff] %v2478_v48 }
 0x221   : > { %v1250_v52 = vpop.f32.mrf.mxu0  ;;  %v1654_v54 = vpop.f32.mrf.mxu1 }
 0x222   : > { %2669 = vst [vmem:[%s3789_s15 + $0x428] sm:$0xff] %v2477_v50  ;;  %v2479_v53 = vadd.f32 %v3777_v9, %v1250_v52  ;;  %v2481_v55 = vadd.f32 %v3780_v11, %v1654_v54 }
 0x223   : > { %v1252_v56 = vpop.f32.mrf.mxu0  ;;  %v1656_v58 = vpop.f32.mrf.mxu1 }
 0x224   : > { %2671 = vst [vmem:[%s3789_s15 + $0x438] sm:$0xff] %v2479_v53  ;;  %v2480_v57 = vadd.f32 %v3783_v13, %v1252_v56  ;;  %2673 = vst [vmem:[%s3789_s15 + $0x448] sm:$0xff] %v2481_v55 }
 0x225   : > { %v1256_v59 = vpop.f32.mrf.mxu0  ;;  %v1659_v61 = vpop.f32.mrf.mxu1 }
 0x226   : > { %2672 = vst [vmem:[%s3789_s15 + $0x440] sm:$0xff] %v2480_v57  ;;  %v2482_v60 = vadd.f32 %v3777_v9, %v1256_v59  ;;  %v2484_v62 = vadd.f32 %v3780_v11, %v1659_v61 }
 0x227   : > { %v1258_v63 = vpop.f32.mrf.mxu0  ;;  %v1661_v2 = vpop.f32.mrf.mxu1 }
 0x228   : > { %2674 = vst [vmem:[%s3789_s15 + $0x450] sm:$0xff] %v2482_v60  ;;  %v2483_v1 = vadd.f32 %v3783_v13, %v1258_v63  ;;  %2676 = vst [vmem:[%s3789_s15 + $0x460] sm:$0xff] %v2484_v62 }
 0x229   : > { %v1262_v3 = vpop.f32.mrf.mxu0  ;;  %v1664_v5 = vpop.f32.mrf.mxu1 }
 0x22a   : > { %2675 = vst [vmem:[%s3789_s15 + $0x458] sm:$0xff] %v2483_v1  ;;  %v2485_v4 = vadd.f32 %v3777_v9, %v1262_v3  ;;  %v2487_v6 = vadd.f32 %v3780_v11, %v1664_v5 }
 0x22b   : > { %v1264_v7 = vpop.f32.mrf.mxu0  ;;  %v1666_v10 = vpop.f32.mrf.mxu1 }
 0x22c   : > { %2677 = vst [vmem:[%s3789_s15 + $0x468] sm:$0xff] %v2485_v4  ;;  %v2486_v8 = vadd.f32 %v3783_v13, %v1264_v7  ;;  %2679 = vst [vmem:[%s3789_s15 + $0x478] sm:$0xff] %v2487_v6 }
 0x22d   : > { %v1268_v12 = vpop.f32.mrf.mxu0  ;;  %v1669_v15 = vpop.f32.mrf.mxu1 }
 0x22e   : > { %2678 = vst [vmem:[%s3789_s15 + $0x470] sm:$0xff] %v2486_v8  ;;  %v2488_v14 = vadd.f32 %v3777_v9, %v1268_v12  ;;  %v2490_v16 = vadd.f32 %v3780_v11, %v1669_v15 }
 0x22f   : > { %v1270_v17 = vpop.f32.mrf.mxu0  ;;  %v1671_v19 = vpop.f32.mrf.mxu1 }
 0x230   : > { %2680 = vst [vmem:[%s3789_s15 + $0x480] sm:$0xff] %v2488_v14  ;;  %v2489_v18 = vadd.f32 %v3783_v13, %v1270_v17  ;;  %2682 = vst [vmem:[%s3789_s15 + $0x490] sm:$0xff] %v2490_v16 }
 0x231   : > { %v1274_v20 = vpop.f32.mrf.mxu0  ;;  %v1674_v22 = vpop.f32.mrf.mxu1 }
 0x232   : > { %2681 = vst [vmem:[%s3789_s15 + $0x488] sm:$0xff] %v2489_v18  ;;  %v2491_v21 = vadd.f32 %v3777_v9, %v1274_v20  ;;  %v2493_v23 = vadd.f32 %v3780_v11, %v1674_v22 }
 0x233   : > { %v1276_v24 = vpop.f32.mrf.mxu0  ;;  %v1676_v26 = vpop.f32.mrf.mxu1 }
 0x234   : > { %2683 = vst [vmem:[%s3789_s15 + $0x498] sm:$0xff] %v2491_v21  ;;  %v2492_v25 = vadd.f32 %v3783_v13, %v1276_v24  ;;  %2685 = vst [vmem:[%s3789_s15 + $0x4a8] sm:$0xff] %v2493_v23 }
 0x235   : > { %v1280_v27 = vpop.f32.mrf.mxu0  ;;  %v1679_v29 = vpop.f32.mrf.mxu1 }
 0x236   : > { %2684 = vst [vmem:[%s3789_s15 + $0x4a0] sm:$0xff] %v2492_v25  ;;  %v2494_v28 = vadd.f32 %v3777_v9, %v1280_v27  ;;  %v2496_v30 = vadd.f32 %v3780_v11, %v1679_v29 }
 0x237   : > { %v1282_v31 = vpop.f32.mrf.mxu0  ;;  %v1681_v33 = vpop.f32.mrf.mxu1 }
 0x238   : > { %2686 = vst [vmem:[%s3789_s15 + $0x4b0] sm:$0xff] %v2494_v28  ;;  %v2495_v32 = vadd.f32 %v3783_v13, %v1282_v31  ;;  %2688 = vst [vmem:[%s3789_s15 + $0x4c0] sm:$0xff] %v2496_v30 }
 0x239   : > { %v1286_v34 = vpop.f32.mrf.mxu0  ;;  %v1684_v36 = vpop.f32.mrf.mxu1 }
 0x23a   : > { %2687 = vst [vmem:[%s3789_s15 + $0x4b8] sm:$0xff] %v2495_v32  ;;  %v2497_v35 = vadd.f32 %v3777_v9, %v1286_v34  ;;  %v2499_v37 = vadd.f32 %v3780_v11, %v1684_v36 }
 0x23b   : > { %v1288_v38 = vpop.f32.mrf.mxu0  ;;  %v1686_v39 = vpop.f32.mrf.mxu1 }
 0x23c   : > { %2689 = vst [vmem:[%s3789_s15 + $0x4c8] sm:$0xff] %v2497_v35  ;;  %v2498_v0 = vadd.f32 %v3783_v13, %v1288_v38  ;;  %2691 = vst [vmem:[%s3789_s15 + $0x4d8] sm:$0xff] %v2499_v37 }
 0x23d   : > { %v1292_v40 = vpop.f32.mrf.mxu0  ;;  %v1689_v42 = vpop.f32.mrf.mxu1 }
 0x23e   : > { %2690 = vst [vmem:[%s3789_s15 + $0x4d0] sm:$0xff] %v2498_v0  ;;  %v2500_v41 = vadd.f32 %v3777_v9, %v1292_v40  ;;  %v2502_v43 = vadd.f32 %v3780_v11, %v1689_v42 }
 0x23f   : > { %v1294_v44 = vpop.f32.mrf.mxu0  ;;  %v1691_v46 = vpop.f32.mrf.mxu1 }
 0x240   : > { %2692 = vst [vmem:[%s3789_s15 + $0x4e0] sm:$0xff] %v2500_v41  ;;  %v2501_v45 = vadd.f32 %v3783_v13, %v1294_v44  ;;  %2694 = vst [vmem:[%s3789_s15 + $0x4f0] sm:$0xff] %v2502_v43 }
 0x241   : > { %v1298_v47 = vpop.f32.mrf.mxu0  ;;  %v1694_v49 = vpop.f32.mrf.mxu1 }
 0x242   : > { %2693 = vst [vmem:[%s3789_s15 + $0x4e8] sm:$0xff] %v2501_v45  ;;  %v2503_v48 = vadd.f32 %v3777_v9, %v1298_v47  ;;  %v2505_v50 = vadd.f32 %v3780_v11, %v1694_v49 }
 0x243   : > { %v1300_v51 = vpop.f32.mrf.mxu0  ;;  %v1696_v53 = vpop.f32.mrf.mxu1 }
 0x244   : > { %2695 = vst [vmem:[%s3789_s15 + $0x4f8] sm:$0xff] %v2503_v48  ;;  %v2504_v52 = vadd.f32 %v3783_v13, %v1300_v51  ;;  %2697 = vst [vmem:[%s3789_s15 + $0x508] sm:$0xff] %v2505_v50 }
 0x245   : > { %v1304_v54 = vpop.f32.mrf.mxu0  ;;  %v1699_v56 = vpop.f32.mrf.mxu1 }
 0x246   : > { %2696 = vst [vmem:[%s3789_s15 + $0x500] sm:$0xff] %v2504_v52  ;;  %v2506_v55 = vadd.f32 %v3777_v9, %v1304_v54  ;;  %v2508_v57 = vadd.f32 %v3780_v11, %v1699_v56 }
 0x247   : > { %v1306_v58 = vpop.f32.mrf.mxu0  ;;  %v1701_v60 = vpop.f32.mrf.mxu1 }
 0x248   : > { %2698 = vst [vmem:[%s3789_s15 + $0x510] sm:$0xff] %v2506_v55  ;;  %v2507_v59 = vadd.f32 %v3783_v13, %v1306_v58  ;;  %2700 = vst [vmem:[%s3789_s15 + $0x520] sm:$0xff] %v2508_v57 }
 0x249   : > { %v1310_v61 = vpop.f32.mrf.mxu0  ;;  %v1704_v63 = vpop.f32.mrf.mxu1 }
 0x24a   : > { %2699 = vst [vmem:[%s3789_s15 + $0x518] sm:$0xff] %v2507_v59  ;;  %v2509_v62 = vadd.f32 %v3777_v9, %v1310_v61  ;;  %v2511_v1 = vadd.f32 %v3780_v11, %v1704_v63 }
 0x24b   : > { %v1312_v2 = vpop.f32.mrf.mxu0  ;;  %v1706_v4 = vpop.f32.mrf.mxu1 }
 0x24c   : > { %2701 = vst [vmem:[%s3789_s15 + $0x528] sm:$0xff] %v2509_v62  ;;  %v2510_v3 = vadd.f32 %v3783_v13, %v1312_v2  ;;  %2703 = vst [vmem:[%s3789_s15 + $0x538] sm:$0xff] %v2511_v1 }
 0x24d   : > { %v1316_v5 = vpop.f32.mrf.mxu0  ;;  %v1709_v7 = vpop.f32.mrf.mxu1 }
 0x24e   : > { %2702 = vst [vmem:[%s3789_s15 + $0x530] sm:$0xff] %v2510_v3  ;;  %v2512_v6 = vadd.f32 %v3777_v9, %v1316_v5  ;;  %v2514_v8 = vadd.f32 %v3780_v11, %v1709_v7 }
 0x24f   : > { %v1318_v10 = vpop.f32.mrf.mxu0  ;;  %v1711_v14 = vpop.f32.mrf.mxu1 }
 0x250   : > { %2704 = vst [vmem:[%s3789_s15 + $0x540] sm:$0xff] %v2512_v6  ;;  %v2513_v12 = vadd.f32 %v3783_v13, %v1318_v10  ;;  %2706 = vst [vmem:[%s3789_s15 + $0x550] sm:$0xff] %v2514_v8 }
 0x251   : > { %v1322_v15 = vpop.f32.mrf.mxu0  ;;  %v1714_v17 = vpop.f32.mrf.mxu1 }
 0x252   : > { %2705 = vst [vmem:[%s3789_s15 + $0x548] sm:$0xff] %v2513_v12  ;;  %v2515_v16 = vadd.f32 %v3777_v9, %v1322_v15  ;;  %v2517_v18 = vadd.f32 %v3780_v11, %v1714_v17 }
 0x253   : > { %v1324_v19 = vpop.f32.mrf.mxu0  ;;  %v1716_v21 = vpop.f32.mrf.mxu1 }
 0x254   : > { %2707 = vst [vmem:[%s3789_s15 + $0x558] sm:$0xff] %v2515_v16  ;;  %v2516_v20 = vadd.f32 %v3783_v13, %v1324_v19  ;;  %2709 = vst [vmem:[%s3789_s15 + $0x568] sm:$0xff] %v2517_v18 }
 0x255   : > { %v1328_v22 = vpop.f32.mrf.mxu0  ;;  %v1719_v24 = vpop.f32.mrf.mxu1 }
 0x256   : > { %2708 = vst [vmem:[%s3789_s15 + $0x560] sm:$0xff] %v2516_v20  ;;  %v2518_v23 = vadd.f32 %v3777_v9, %v1328_v22  ;;  %v2520_v25 = vadd.f32 %v3780_v11, %v1719_v24 }
 0x257   : > { %v1330_v26 = vpop.f32.mrf.mxu0  ;;  %v1721_v28 = vpop.f32.mrf.mxu1 }
 0x258   : > { %2710 = vst [vmem:[%s3789_s15 + $0x570] sm:$0xff] %v2518_v23  ;;  %v2519_v27 = vadd.f32 %v3783_v13, %v1330_v26  ;;  %2712 = vst [vmem:[%s3789_s15 + $0x580] sm:$0xff] %v2520_v25 }
 0x259   : > { %v1334_v29 = vpop.f32.mrf.mxu0  ;;  %v1724_v31 = vpop.f32.mrf.mxu1 }
 0x25a   : > { %2711 = vst [vmem:[%s3789_s15 + $0x578] sm:$0xff] %v2519_v27  ;;  %v2521_v30 = vadd.f32 %v3777_v9, %v1334_v29  ;;  %v2523_v32 = vadd.f32 %v3780_v11, %v1724_v31 }
 0x25b   : > { %v1336_v33 = vpop.f32.mrf.mxu0  ;;  %v1726_v35 = vpop.f32.mrf.mxu1 }
 0x25c   : > { %2713 = vst [vmem:[%s3789_s15 + $0x588] sm:$0xff] %v2521_v30  ;;  %v2522_v34 = vadd.f32 %v3783_v13, %v1336_v33  ;;  %2715 = vst [vmem:[%s3789_s15 + $0x598] sm:$0xff] %v2523_v32 }
 0x25d   : > { %v1340_v36 = vpop.f32.mrf.mxu0  ;;  %v1729_v38 = vpop.f32.mrf.mxu1 }
 0x25e   : > { %2714 = vst [vmem:[%s3789_s15 + $0x590] sm:$0xff] %v2522_v34  ;;  %v2524_v37 = vadd.f32 %v3777_v9, %v1340_v36  ;;  %v2526_v0 = vadd.f32 %v3780_v11, %v1729_v38 }
 0x25f   : > { %v1342_v39 = vpop.f32.mrf.mxu0  ;;  %v1731_v41 = vpop.f32.mrf.mxu1 }
 0x260   : > { %2716 = vst [vmem:[%s3789_s15 + $0x5a0] sm:$0xff] %v2524_v37  ;;  %v2525_v40 = vadd.f32 %v3783_v13, %v1342_v39  ;;  %2718 = vst [vmem:[%s3789_s15 + $0x5b0] sm:$0xff] %v2526_v0 }
 0x261   : > { %v1346_v42 = vpop.f32.mrf.mxu0  ;;  %v1734_v44 = vpop.f32.mrf.mxu1 }
 0x262   : > { %2717 = vst [vmem:[%s3789_s15 + $0x5a8] sm:$0xff] %v2525_v40  ;;  %v2527_v43 = vadd.f32 %v3777_v9, %v1346_v42  ;;  %v2529_v45 = vadd.f32 %v3780_v11, %v1734_v44 }
 0x263   : > { %v1348_v46 = vpop.f32.mrf.mxu0  ;;  %v1736_v48 = vpop.f32.mrf.mxu1 }
 0x264   : > { %2719 = vst [vmem:[%s3789_s15 + $0x5b8] sm:$0xff] %v2527_v43  ;;  %v2528_v47 = vadd.f32 %v3783_v13, %v1348_v46  ;;  %2721 = vst [vmem:[%s3789_s15 + $0x5c8] sm:$0xff] %v2529_v45 }
 0x265   : > { %v1352_v49 = vpop.f32.mrf.mxu0  ;;  %v1739_v51 = vpop.f32.mrf.mxu1 }
 0x266   : > { %2720 = vst [vmem:[%s3789_s15 + $0x5c0] sm:$0xff] %v2528_v47  ;;  %v2530_v50 = vadd.f32 %v3777_v9, %v1352_v49  ;;  %v2532_v52 = vadd.f32 %v3780_v11, %v1739_v51 }
 0x267   : > { %v1354_v53 = vpop.f32.mrf.mxu0  ;;  %v1741_v55 = vpop.f32.mrf.mxu1 }
 0x268   : > { %2722 = vst [vmem:[%s3789_s15 + $0x5d0] sm:$0xff] %v2530_v50  ;;  %v2531_v54 = vadd.f32 %v3783_v13, %v1354_v53  ;;  %2724 = vst [vmem:[%s3789_s15 + $0x5e0] sm:$0xff] %v2532_v52 }
 0x269   : > { %v1358_v56 = vpop.f32.mrf.mxu0  ;;  %v1744_v58 = vpop.f32.mrf.mxu1 }
 0x26a   : > { %2723 = vst [vmem:[%s3789_s15 + $0x5d8] sm:$0xff] %v2531_v54  ;;  %v2533_v57 = vadd.f32 %v3777_v9, %v1358_v56  ;;  %v2535_v59 = vadd.f32 %v3780_v11, %v1744_v58 }
 0x26b   : > { %v1360_v60 = vpop.f32.mrf.mxu0  ;;  %v1746_v62 = vpop.f32.mrf.mxu1 }
 0x26c   : > { %2725 = vst [vmem:[%s3789_s15 + $0x5e8] sm:$0xff] %v2533_v57  ;;  %v2534_v61 = vadd.f32 %v3783_v13, %v1360_v60  ;;  %2727 = vst [vmem:[%s3789_s15 + $0x5f8] sm:$0xff] %v2535_v59 }
 0x26e   : > { %2726 = vst [vmem:[%s3789_s15 + $0x5f0] sm:$0xff] %v2534_v61 }
 0x26f   : > { %3153 = shalt.err (!%p3150_p9)
}
 0x270   : > { %s3154_s5 = scalar_lea.hbm %s4201_s12, 24576  ;;  %s3158_s29 = scalar_lea.hbm %s4333_s3, 98304 }
 0x271   : > { %p3155_p10 = scmp.ne.s32.totalorder %s4201_s12, %s3154_s5  ;;  %p3159_p12 = scmp.lt.s32.totalorder %s4201_s12, %s4333_s3 }
 0x272   : > { %p3160_p0 = scmp.lt.s32.totalorder %s3158_s29, %s3154_s5 }
 0x273   : > { %p3156_p11 = pnand %p3155_p10, %p3489_p2 }
 0x274   : > { %p3161_p4 = por %p3160_p0, %p3159_p12 }
 0x275   : > { %p3157_p3 = pneg %p3156_p11 }
 0x277   : > { %p3162_p5 = pnand %p3161_p4, %p3157_p3 }
 0x279   : > { %3165 = shalt.err (!%p3162_p5)
}
 0x27a   : > { %s3300_s15 = smov 384   ;;  %s3301_s22 = smov 768  }
 0x27b   : > { %s3302_s27 = smov 24  }
 0x27c   : > { %2917 = dma.vmem_to_hbm [thread:$0]  (%p3489_p2), %s4204_s18, 24576, %s4201_s12, %s4212_s14, %s3300_s15, %s3301_s22, %s3302_s27  }
 0x27d PF: > { %s4334_s7 = sld [smem:[#allocation13_spill]]  ;;  %p2934_p7 = scmp.ge.s32.totalorder %s3288_s25, 2 }
 0x27e   : > { %p4335_p1 = scmp.ne.s32.totalorder %s4326_s6, 0 }
 0x280   : > { %p2930_p8 = pnand %p2934_p7, %p4335_p1 }
 0x282   : > { %p2931_p13 = pneg %p2930_p8 }
 0x283   : > { %s2760_s10 = sand.u32 1, %s4334_s7  }
 0x284   : > { %s2761_s4 = scalar_lea.sflag [#allocation5], %s2760_s10 }
 0x285   : > { %3231 = dma.done.wait (%p2931_p13), %s2761_s4, 24576  }
 0x286   : > { %3233 = vsyncadd (%p2931_p13), %s2761_s4, 4294942720  ;;  %s22_s25 = sadd.s32 1, %s3288_s25   ;;  %s4337_s9 = sld [smem:[#allocation14_spill]] }
 0x287   : > { %p4240_p6 = scmp.ge.s32.totalorder %s22_s25, 6   ;;  %s4338_s14 = sld [smem:[#allocation24_spill]] }
 0x288   : > { %s4339_s18 = sld [smem:[#allocation22_spill]]  ;;  %s4346_s12 = smov %s3240_s13 }
 0x289   : > { %s4340_s21 = sld [smem:[#allocation15_spill]]  ;;  %s4348_s15 = smov %s3252_s16 }
 0x28a   : > { %s4341_s20 = sld [smem:[#allocation23_spill]]  ;;  %s4349_s16 = smov %s3256_s17 }
 0x28b   : > { %s4342_s6 = sld [smem:[#allocation18_spill]] }
 0x28c   : > { %s4343_s22 = sld [smem:[#allocation19_spill]]  ;;  %s4347_s13 = smov %s4337_s9 }
 0x28d   : > { %s4344_s23 = sld [smem:[#allocation20_spill]]  ;;  %21 = sbr.rel (!%p4240_p6) target bundleno = 16 (0x10), region = 109 }
 0x28e   : > { %s4345_s24 = sld [smem:[#allocation21_spill]]  ;;  %s4350_s17 = smov %s4339_s18 }
 0x28f   : > { %s4351_s18 = smov %s3264_s19  ;;  %s4352_s19 = smov %s4340_s21 }
 0x291   : > { %s4353_s21 = smov %s4342_s6 }
 0x292   :  { %2766 = vsyncpa [#allocation4], 1 }
 0x293   :  { %2768 = vsyncpa [#allocation4 + $0x1], 1 }
 0x294   :  { %2769 = vsyncpa [#allocation7], 1 }
 0x295   :  { %2771 = vsyncpa [#allocation7 + $0x1], 1 }
 0x296   :  { %2772 = vsyncpa [#allocation5], 1 }
 0x297   :  { %2774 = vsyncpa [#allocation5 + $0x1], 1 }

</bundles_post_ra>
